<compile_context>
chip_gen: v5e
topology: v5e:2x2
jax: 0.10.0
libtpu: 0.0.40
codegen_flags: <defaults>
</compile_context>

<pallas_src>
import math
import numpy as np
import jax
import jax.numpy as jnp
from jax.experimental import pallas as pl
from jax.experimental.pallas import tpu as pltpu


# ----------------------------- schedule helpers -----------------------------

def get_beta_schedule(beta_start, beta_end, num_diffusion_timesteps):
    return np.linspace(beta_start, beta_end, num_diffusion_timesteps, dtype=np.float64)


def get_ddim_steps(total_time_steps, sample_steps, strength):
    step = total_time_steps // sample_steps
    ddim_steps = np.arange(0, total_time_steps - 1, step)
    ddim_steps = ddim_steps[: int(sample_steps * strength) + 1]
    ddim_steps = np.flip(ddim_steps)
    return [int(t) for t in ddim_steps]


# ------------------------------ tiling helpers -------------------------------

def _row_block(rows, target=512):
    """Largest row tile that is a multiple of 8, divides `rows`, and is
    <= target. Falls back to the full row extent (block == full dim, which
    Mosaic accepts) for small / odd row counts."""
    if rows % 8 == 0 and rows > target:
        tm = target
        while rows % tm != 0:
            tm -= 8
        return tm
    return rows


def _col_block(cols, target=2048):
    """Largest lane tile that is a multiple of 128, divides `cols`, <= target."""
    if cols % 128 == 0 and cols > target:
        tp = target
        while cols % tp != 0:
            tp -= 128
        return tp
    return cols


# ------------------------------ Pallas kernels -------------------------------

def diffuse_init(x_flat, noise_flat, c0, c1):
    """Fused: clf2diff + forward-diffuse to timestep t0, plus the uint8-style
    quantisation of the original image used by the FFT exchange.
      x_t  = c0*(2x-1) + c1*noise
      x_q  = floor(clip(x*255, 0, 255))
    x_flat: (B*C, H*W) in [0,1]."""
    c0 = float(c0)
    c1 = float(c1)
    R, L = x_flat.shape
    tm = _row_block(R)

    def kernel(x_ref, n_ref, xt_ref, xq_ref):
        x = x_ref[...]
        xt_ref[...] = c0 * (2.0 * x - 1.0) + c1 * n_ref[...]
        xq_ref[...] = jnp.floor(jnp.clip(x * 255.0, 0.0, 255.0))

    spec = pl.BlockSpec((tm, L), lambda i: (i, 0))
    return pl.pallas_call(
        kernel,
        out_shape=(jax.ShapeDtypeStruct((R, L), jnp.float32),
                   jax.ShapeDtypeStruct((R, L), jnp.float32)),
        grid=(R // tm,),
        in_specs=[spec, spec],
        out_specs=(spec, spec),
        compiler_params=pltpu.CompilerParams(dimension_semantics=("parallel",)),
    )(x_flat, noise_flat)


def diffusion_mlp_x0(x_chan, params, t_norm, s0, s1):
    """Synthetic time-conditioned per-pixel MLP (noise prediction) fused with
    the DDIM x0 estimate and the uint8-style quantisation of x0.
    x_chan: (C, P) with P = B*H*W on the lane axis.
    Returns (pred_noise, x0_quant), both (C, P) float32."""
    C, P = x_chan.shape
    t_norm = float(t_norm)
    s0 = float(s0)
    s1 = float(s1)
    inv_s0 = 1.0 / s0
    tp = _col_block(P)

    def kernel(x_ref, w1t_ref, b1_ref, wt_ref, w2t_ref, b2_ref,
               pred_ref, x0q_ref):
        x = x_ref[...]                                          # (C, tp)
        # Layer 1: contraction over C (=3) done as VPU broadcast-FMAs
        # (pixels stay on the lane axis; no K=3 MXU matmul).
        h = w1t_ref[:, 0:1] * x[0:1, :]
        for k in range(1, C):
            h = h + w1t_ref[:, k:k + 1] * x[k:k + 1, :]
        h = h + (t_norm * wt_ref[...] + b1_ref[...])            # (hid, tp)
        h = jnp.maximum(h, 0.0)
        # Layer 2: contraction over hid (=32) with a lane-dense (C, tp) output.
        pred = jnp.dot(w2t_ref[...], h,
                       preferred_element_type=jnp.float32) + b2_ref[...]
        pred_ref[...] = pred
        # Fused DDIM x0 estimate + diff2clf*255 + clip + truncation
        # (emulates the torch uint8 cast, with the clip the review asked for).
        x0t = (x - s1 * pred) * inv_s0
        x0q_ref[...] = jnp.floor(jnp.clip((x0t + 1.0) * 127.5, 0.0, 255.0))

    def full(shape):
        return pl.BlockSpec(shape, lambda i: (0, 0))

    xspec = pl.BlockSpec((C, tp), lambda i: (0, i))
    return pl.pallas_call(
        kernel,
        out_shape=(jax.ShapeDtypeStruct((C, P), jnp.float32),
                   jax.ShapeDtypeStruct((C, P), jnp.float32)),
        grid=(P // tp,),
        in_specs=[xspec,
                  full(params["w1t"].shape), full(params["b1"].shape),
                  full(params["wt"].shape), full(params["w2t"].shape),
                  full(params["b2"].shape)],
        out_specs=(xspec, xspec),
        compiler_params=pltpu.CompilerParams(dimension_semantics=("parallel",)),
    )(x_chan, params["w1t"], params["b1"], params["wt"],
      params["w2t"], params["b2"])


def fft_exchange(re_x, im_x, re_0, im_0, mask_a, mask_p):
    """Low-pass amplitude exchange + low-pass phase exchange, producing the
    real/imag parts of the new (shifted) spectrum directly — no angle/exp
    needed: exp(i*angle(f)) == f/|f| (== 1+0j when |f| == 0, matching torch).
    The reference's clip(phase, phase_x±delta) after the exchange is a
    numerical no-op and is dropped.
    Data inputs are (B*C, H*W); masks are (1, H*W) and broadcast in-kernel."""
    R, L = re_x.shape
    tm = _row_block(R)

    def kernel(rx_ref, ix_ref, r0_ref, i0_ref, ma_ref, mp_ref, or_ref, oi_ref):
        rx, ix = rx_ref[...], ix_ref[...]
        r0, i0 = r0_ref[...], i0_ref[...]
        amp_x = jnp.sqrt(rx * rx + ix * ix)
        amp_0 = jnp.sqrt(r0 * r0 + i0 * i0)
        ma = ma_ref[...] > 0.5
        mp = mp_ref[...] > 0.5
        new_amp = jnp.where(ma, amp_x, amp_0)
        sx = jnp.where(amp_x > 0.0, amp_x, 1.0)
        s0 = jnp.where(amp_0 > 0.0, amp_0, 1.0)
        ux_re = jnp.where(amp_x > 0.0, rx / sx, 1.0)
        ux_im = jnp.where(amp_x > 0.0, ix / sx, 0.0)
        u0_re = jnp.where(amp_0 > 0.0, r0 / s0, 1.0)
        u0_im = jnp.where(amp_0 > 0.0, i0 / s0, 0.0)
        u_re = jnp.where(mp, ux_re, u0_re)
        u_im = jnp.where(mp, ux_im, u0_im)
        or_ref[...] = new_amp * u_re
        oi_ref[...] = new_amp * u_im

    dspec = pl.BlockSpec((tm, L), lambda i: (i, 0))
    mspec = pl.BlockSpec((1, L), lambda i: (0, 0))
    return pl.pallas_call(
        kernel,
        out_shape=(jax.ShapeDtypeStruct((R, L), jnp.float32),
                   jax.ShapeDtypeStruct((R, L), jnp.float32)),
        grid=(R // tm,),
        in_specs=[dspec, dspec, dspec, dspec, mspec, mspec],
        out_specs=(dspec, dspec),
        compiler_params=pltpu.CompilerParams(dimension_semantics=("parallel",)),
    )(re_x, im_x, re_0, im_0, mask_a, mask_p)


def ddim_update(rec, pred_noise, c_tau, coeff):
    """Fuses: clip(rec,0,255)/255 -> clf2diff -> DDIM step (eta=0, sigma_t=0).
    Writes in place over `rec` via input_output_aliases."""
    c_tau = float(c_tau)
    coeff = float(coeff)
    R, L = rec.shape
    tm = _row_block(R)

    def kernel(r_ref, n_ref, o_ref):
        x0t = jnp.clip(r_ref[...], 0.0, 255.0) * (2.0 / 255.0) - 1.0
        o_ref[...] = c_tau * x0t + coeff * n_ref[...]

    spec = pl.BlockSpec((tm, L), lambda i: (i, 0))
    return pl.pallas_call(
        kernel,
        out_shape=jax.ShapeDtypeStruct((R, L), jnp.float32),
        grid=(R // tm,),
        in_specs=[spec, spec],
        out_specs=spec,
        input_output_aliases={0: 0},
        compiler_params=pltpu.CompilerParams(dimension_semantics=("parallel",)),
    )(rec, pred_noise)


def classifier(x_flat, wc_pad, bc_pad):
    """Fused diff2clf + linear classifier: ((x+1)/2) @ wc_pad + bc_pad.
    wc/bc are lane-padded to a multiple of 128 so the output store is
    lane-dense; the caller slices back to the real class count."""
    B, F = x_flat.shape
    npad = wc_pad.shape[1]

    def kernel(x_ref, w_ref, b_ref, o_ref):
        xc = (x_ref[...] + 1.0) * 0.5
        o_ref[...] = jnp.dot(xc, w_ref[...],
                             preferred_element_type=jnp.float32) + b_ref[...]

    return pl.pallas_call(
        kernel,
        out_shape=jax.ShapeDtypeStruct((B, npad), jnp.float32),
        grid=(1,),
        in_specs=[pl.BlockSpec((B, F), lambda i: (0, 0)),
                  pl.BlockSpec((F, npad), lambda i: (0, 0)),
                  pl.BlockSpec((1, npad), lambda i: (0, 0))],
        out_specs=pl.BlockSpec((B, npad), lambda i: (0, 0)),
    )(x_flat, wc_pad, bc_pad)


# ------------------------------ forward module -------------------------------

class PurificationForwardPallas:
    def __init__(self, params, strength, ddim_steps, amplitude_cut_range,
                 phase_cut_range, delta, num_classes, is_imagenet=False):
        self.params = params
        self.is_imagenet = is_imagenet            # False in this synthetic setup
        self.strength = strength
        self.amplitude_cut_range = amplitude_cut_range
        self.phase_cut_range = phase_cut_range
        self.delta = delta                        # kept for API parity; the clip
        #                                           it guards is a no-op (removed)
        self.num_classes = num_classes
        self.num_train_timesteps = 1000
        self.sample_steps = ddim_steps
        self.timesteps = get_ddim_steps(self.num_train_timesteps,
                                        self.sample_steps, self.strength)
        self.eta = 0.0
        self.betas = get_beta_schedule(0.0001, 0.02, 1000)
        self.alphas = 1.0 - self.betas
        self.alphas_cumprod = np.cumprod(self.alphas, axis=0)
        # Whole forward (denoise loop + classifier) compiled once.
        self._forward_jit = jax.jit(self._forward_impl)

    # --- frequency masks (numpy, static, flattened to (1, H*W)) ---
    @staticmethod
    def _low_freq_mask(rows, cols, cut):
        u = np.arange(-cols // 2, cols // 2)
        v = np.arange(-rows // 2, rows // 2)
        U, V = np.meshgrid(u, v)
        freq = np.sqrt(U ** 2 + V ** 2)
        return (freq <= cut).astype(np.float32).reshape(1, rows * cols)

    # --- jitted forward body ---
    def _forward_impl(self, params, x, key):
        B, C, H, W = x.shape
        BC, HW = B * C, H * W
        P, F = B * H * W, C * H * W

        mask_a = jnp.asarray(self._low_freq_mask(H, W, self.amplitude_cut_range))
        mask_p = jnp.asarray(self._low_freq_mask(H, W, self.phase_cut_range))

        abar = self.alphas_cumprod
        t0 = self.timesteps[0]

        # diffuse_t_steps(clf2diff(x), timesteps[0]) + quantised original image
        noise = jax.random.normal(key, (BC, HW), jnp.float32)
        x_t_flat, xq_flat = diffuse_init(x.reshape(BC, HW), noise,
                                         math.sqrt(abar[t0]),
                                         math.sqrt(1.0 - abar[t0]))

        # TODO(synk): FFT / IFFT have no Pallas TPU equivalent; they stay in
        # plain JAX (XLA FFT). Everything around them is Pallas.
        def shifted_fft(img_bchw):
            f = jnp.fft.fftshift(jnp.fft.fft2(img_bchw, axes=(-2, -1)),
                                 axes=(-2, -1))
            return (jnp.real(f).astype(jnp.float32).reshape(BC, HW),
                    jnp.imag(f).astype(jnp.float32).reshape(BC, HW))

        # Spectrum of the original image is constant across DDIM steps.
        re_x, im_x = shifted_fft(xq_flat.reshape(B, C, H, W))

        for t, tau in zip(self.timesteps[:-1], self.timesteps[1:]):
            sigma_t = 0.0                              # eta == 0.0
            s0 = math.sqrt(abar[t])
            s1 = math.sqrt(1.0 - abar[t])
            c_tau = math.sqrt(abar[tau])
            coeff = math.sqrt(max(1.0 - abar[tau] - sigma_t ** 2, 0.0))

            # (B,C,H,W) -> (C, B*H*W): pixels on the lane axis for the MLP.
            x_chan = (x_t_flat.reshape(B, C, H, W)
                      .transpose(1, 0, 2, 3).reshape(C, P))
            pred_chan, x0q_chan = diffusion_mlp_x0(
                x_chan, params, t / float(self.num_train_timesteps), s0, s1)
            pred_flat = (pred_chan.reshape(C, B, H, W)
                         .transpose(1, 0, 2, 3).reshape(BC, HW))
            x0q_bchw = x0q_chan.reshape(C, B, H, W).transpose(1, 0, 2, 3)

            re_0, im_0 = shifted_fft(x0q_bchw)
            new_re, new_im = fft_exchange(re_x, im_x, re_0, im_0,
                                          mask_a, mask_p)

            fshift = (new_re + 1j * new_im).reshape(B, C, H, W)
            rec = jnp.abs(jnp.fft.ifft2(
                jnp.fft.ifftshift(fshift, axes=(-2, -1)), axes=(-2, -1)))
            rec = rec.astype(jnp.float32).reshape(BC, HW)

            # sigma_t == 0, so the stochastic term vanishes exactly
            x_t_flat = ddim_update(rec, pred_flat, c_tau, coeff)

        logits_pad = classifier(x_t_flat.reshape(B, F),
                                params["wc_pad"], params["bc_pad"])
        return logits_pad[:, :self.num_classes]

    def forward(self, x, key):
        return self._forward_jit(self.params, x, key)


# ----------------------------------- main ------------------------------------

if __name__ == "__main__":
    B, C, H, W = 2, 3, 16, 16          # FFT exchange in the spec assumes 3 channels
    HIDDEN, NUM_CLASSES, NPAD = 32, 10, 128
    F = C * H * W

    key = jax.random.PRNGKey(0)
    kp, kx, kn = jax.random.split(key, 3)
    ks = jax.random.split(kp, 7)

    wc = jax.random.normal(ks[5], (F, NUM_CLASSES), jnp.float32) * 0.05
    bc = jax.random.normal(ks[6], (1, NUM_CLASSES), jnp.float32) * 0.01
    params = {
        # diffusion MLP weights stored pre-transposed for the (C, P) layout
        "w1t": jax.random.normal(ks[0], (HIDDEN, C), jnp.float32) * 0.1,
        "b1":  jax.random.normal(ks[1], (HIDDEN, 1), jnp.float32) * 0.01,
        "wt":  jax.random.normal(ks[2], (HIDDEN, 1), jnp.float32) * 0.1,
        "w2t": jax.random.normal(ks[3], (C, HIDDEN), jnp.float32) * 0.1,
        "b2":  jax.random.normal(ks[4], (C, 1), jnp.float32) * 0.01,
        # classifier, lane-padded to 128 output columns
        "wc_pad": jnp.pad(wc, ((0, 0), (0, NPAD - NUM_CLASSES))),
        "bc_pad": jnp.pad(bc, ((0, 0), (0, NPAD - NUM_CLASSES))),
    }

    model = PurificationForwardPallas(
        params,
        strength=0.1,
        ddim_steps=10,
        amplitude_cut_range=4,
        phase_cut_range=4,
        delta=0.6,
        num_classes=NUM_CLASSES,
        is_imagenet=False,
    )

    x = jax.random.uniform(kx, (B, C, H, W), jnp.float32)   # classifier-domain [0,1]

    logits = model.forward(x, kn)
    logits = jax.block_until_ready(logits)
    assert logits.shape == (B, NUM_CLASSES)
    assert bool(jnp.all(jnp.isfinite(logits)))
    print("KERNEL_OK")
</pallas_src>

<mosaic_0001>
module attributes {stable_mosaic.version = 11 : i64} {
  func.func @kernel(%arg0: i32, %arg1: memref<6x256xf32, #tpu.memory_space<vmem>>, %arg2: memref<6x256xf32, #tpu.memory_space<vmem>>, %arg3: memref<6x256xf32, #tpu.memory_space<vmem>>, %arg4: memref<6x256xf32, #tpu.memory_space<vmem>>) attributes {dimension_semantics = [#tpu.dimension_semantics<parallel>], iteration_bounds = array<i64: 1>, scalar_prefetch = 0 : i64, scratch_operands = 0 : i64, tpu.core_type = #tpu.core_type<tc>, window_params = [{transform_indices = @transform_0, window_bounds = array<i64: 6, 256>}, {transform_indices = @transform_1, window_bounds = array<i64: 6, 256>}, {transform_indices = @transform_2, window_bounds = array<i64: 6, 256>}, {transform_indices = @transform_3, window_bounds = array<i64: 6, 256>}]} {
    %c0 = arith.constant 0 : index
    %c0_0 = arith.constant 0 : index
    %0 = vector.load %arg1[%c0, %c0_0] : memref<6x256xf32, #tpu.memory_space<vmem>>, vector<6x256xf32>
    %cst = arith.constant 2.000000e+00 : f32
    %1 = vector.broadcast %cst : f32 to vector<6x256xf32>
    %2 = arith.mulf %1, %0 : vector<6x256xf32>
    %cst_1 = arith.constant 1.000000e+00 : f32
    %3 = vector.broadcast %cst_1 : f32 to vector<6x256xf32>
    %4 = arith.subf %2, %3 : vector<6x256xf32>
    %cst_2 = arith.constant 0.946119248 : f32
    %5 = vector.broadcast %cst_2 : f32 to vector<6x256xf32>
    %6 = arith.mulf %5, %4 : vector<6x256xf32>
    %c0_3 = arith.constant 0 : index
    %c0_4 = arith.constant 0 : index
    %7 = vector.load %arg2[%c0_3, %c0_4] : memref<6x256xf32, #tpu.memory_space<vmem>>, vector<6x256xf32>
    %cst_5 = arith.constant 0.323818475 : f32
    %8 = vector.broadcast %cst_5 : f32 to vector<6x256xf32>
    %9 = arith.mulf %8, %7 : vector<6x256xf32>
    %10 = arith.addf %6, %9 : vector<6x256xf32>
    %c0_6 = arith.constant 0 : index
    %c0_7 = arith.constant 0 : index
    %11 = vector.load %arg3[%c0_6, %c0_7] : memref<6x256xf32, #tpu.memory_space<vmem>>, vector<6x256xf32>
    tpu.vector_store %arg3[%c0_6, %c0_7], %10 {strides = array<i32>} : memref<6x256xf32, #tpu.memory_space<vmem>>, vector<6x256xf32>,
    %cst_8 = arith.constant 2.550000e+02 : f32
    %12 = vector.broadcast %cst_8 : f32 to vector<6x256xf32>
    %13 = arith.mulf %0, %12 : vector<6x256xf32>
    %cst_9 = arith.constant 0.000000e+00 : f32
    %cst_10 = arith.constant 2.550000e+02 : f32
    %14 = vector.broadcast %cst_9 : f32 to vector<6x256xf32>
    %15 = arith.maximumf %14, %13 : vector<6x256xf32>
    %16 = vector.broadcast %cst_10 : f32 to vector<6x256xf32>
    %17 = arith.minimumf %16, %15 : vector<6x256xf32>
    %18 = math.floor %17 : vector<6x256xf32>
    %c0_11 = arith.constant 0 : index
    %c0_12 = arith.constant 0 : index
    %19 = vector.load %arg4[%c0_11, %c0_12] : memref<6x256xf32, #tpu.memory_space<vmem>>, vector<6x256xf32>
    tpu.vector_store %arg4[%c0_11, %c0_12], %18 {strides = array<i32>} : memref<6x256xf32, #tpu.memory_space<vmem>>, vector<6x256xf32>,
    return
  }
  func.func @transform_0(%arg0: i32) -> (i32, i32) {
    %c0_i32 = arith.constant 0 : i32
    %c0_i32_0 = arith.constant 0 : i32
    return %arg0, %c0_i32 : i32, i32
  }
  func.func @transform_1(%arg0: i32) -> (i32, i32) {
    %c0_i32 = arith.constant 0 : i32
    %c0_i32_0 = arith.constant 0 : i32
    return %arg0, %c0_i32 : i32, i32
  }
  func.func @transform_2(%arg0: i32) -> (i32, i32) {
    %c0_i32 = arith.constant 0 : i32
    %c0_i32_0 = arith.constant 0 : i32
    return %arg0, %c0_i32 : i32, i32
  }
  func.func @transform_3(%arg0: i32) -> (i32, i32) {
    %c0_i32 = arith.constant 0 : i32
    %c0_i32_0 = arith.constant 0 : i32
    return %arg0, %c0_i32 : i32, i32
  }
}

module attributes {stable_mosaic.version = 11 : i64} {
  func.func @kernel(%arg0: i32, %arg1: memref<3x512xf32, #tpu.memory_space<vmem>>, %arg2: memref<32x3xf32, #tpu.memory_space<vmem>>, %arg3: memref<32x1xf32, #tpu.memory_space<vmem>>, %arg4: memref<32x1xf32, #tpu.memory_space<vmem>>, %arg5: memref<3x32xf32, #tpu.memory_space<vmem>>, %arg6: memref<3x1xf32, #tpu.memory_space<vmem>>, %arg7: memref<3x512xf32, #tpu.memory_space<vmem>>, %arg8: memref<3x512xf32, #tpu.memory_space<vmem>>) attributes {dimension_semantics = [#tpu.dimension_semantics<parallel>], iteration_bounds = array<i64: 1>, scalar_prefetch = 0 : i64, scratch_operands = 0 : i64, tpu.core_type = #tpu.core_type<tc>, window_params = [{transform_indices = @transform_0, window_bounds = array<i64: 3, 512>}, {pipeline_mode = #tpu.pipeline_mode<synchronous>, transform_indices = @transform_1, window_bounds = array<i64: 32, 3>}, {pipeline_mode = #tpu.pipeline_mode<synchronous>, transform_indices = @transform_2, window_bounds = array<i64: 32, 1>}, {pipeline_mode = #tpu.pipeline_mode<synchronous>, transform_indices = @transform_3, window_bounds = array<i64: 32, 1>}, {pipeline_mode = #tpu.pipeline_mode<synchronous>, transform_indices = @transform_4, window_bounds = array<i64: 3, 32>}, {pipeline_mode = #tpu.pipeline_mode<synchronous>, transform_indices = @transform_5, window_bounds = array<i64: 3, 1>}, {transform_indices = @transform_6, window_bounds = array<i64: 3, 512>}, {transform_indices = @transform_7, window_bounds = array<i64: 3, 512>}]} {
    %c0 = arith.constant 0 : index
    %c0_0 = arith.constant 0 : index
    %0 = vector.load %arg1[%c0, %c0_0] : memref<3x512xf32, #tpu.memory_space<vmem>>, vector<3x512xf32>
    %c0_1 = arith.constant 0 : index
    %c0_2 = arith.constant 0 : index
    %1 = vector.load %arg2[%c0_1, %c0_2] : memref<32x3xf32, #tpu.memory_space<vmem>>, vector<32x1xf32>
    %2 = vector.extract_strided_slice %0 {offsets = [0, 0], sizes = [1, 512], strides = [1, 1]} : vector<3x512xf32> to vector<1x512xf32>
    %3 = vector.broadcast %1 : vector<32x1xf32> to vector<32x512xf32>
    %4 = vector.broadcast %2 : vector<1x512xf32> to vector<32x512xf32>
    %5 = arith.mulf %3, %4 : vector<32x512xf32>
    %c0_3 = arith.constant 0 : index
    %c1 = arith.constant 1 : index
    %6 = vector.load %arg2[%c0_3, %c1] : memref<32x3xf32, #tpu.memory_space<vmem>>, vector<32x1xf32>
    %7 = vector.extract_strided_slice %0 {offsets = [1, 0], sizes = [1, 512], strides = [1, 1]} : vector<3x512xf32> to vector<1x512xf32>
    %8 = vector.broadcast %6 : vector<32x1xf32> to vector<32x512xf32>
    %9 = vector.broadcast %7 : vector<1x512xf32> to vector<32x512xf32>
    %10 = arith.mulf %8, %9 : vector<32x512xf32>
    %11 = arith.addf %5, %10 : vector<32x512xf32>
    %c0_4 = arith.constant 0 : index
    %c2 = arith.constant 2 : index
    %12 = vector.load %arg2[%c0_4, %c2] : memref<32x3xf32, #tpu.memory_space<vmem>>, vector<32x1xf32>
    %13 = vector.extract_strided_slice %0 {offsets = [2, 0], sizes = [1, 512], strides = [1, 1]} : vector<3x512xf32> to vector<1x512xf32>
    %14 = vector.broadcast %12 : vector<32x1xf32> to vector<32x512xf32>
    %15 = vector.broadcast %13 : vector<1x512xf32> to vector<32x512xf32>
    %16 = arith.mulf %14, %15 : vector<32x512xf32>
    %17 = arith.addf %11, %16 : vector<32x512xf32>
    %c0_5 = arith.constant 0 : index
    %c0_6 = arith.constant 0 : index
    %18 = vector.load %arg4[%c0_5, %c0_6] : memref<32x1xf32, #tpu.memory_space<vmem>>, vector<32x1xf32>
    %cst = arith.constant 1.000000e-01 : f32
    %19 = vector.broadcast %cst : f32 to vector<32x1xf32>
    %20 = arith.mulf %19, %18 : vector<32x1xf32>
    %c0_7 = arith.constant 0 : index
    %c0_8 = arith.constant 0 : index
    %21 = vector.load %arg3[%c0_7, %c0_8] : memref<32x1xf32, #tpu.memory_space<vmem>>, vector<32x1xf32>
    %22 = arith.addf %20, %21 : vector<32x1xf32>
    %23 = vector.broadcast %22 : vector<32x1xf32> to vector<32x512xf32>
    %24 = arith.addf %17, %23 : vector<32x512xf32>
    %cst_9 = arith.constant 0.000000e+00 : f32
    %25 = vector.broadcast %cst_9 : f32 to vector<32x512xf32>
    %26 = arith.maximumf %24, %25 : vector<32x512xf32>
    %c0_10 = arith.constant 0 : index
    %c0_11 = arith.constant 0 : index
    %27 = vector.load %arg5[%c0_10, %c0_11] : memref<3x32xf32, #tpu.memory_space<vmem>>, vector<3x32xf32>
    %cst_12 = arith.constant dense<0.000000e+00> : vector<3x512xf32>
    %28 = tpu.matmul %27, %26, %cst_12 {dimension_numbers = #tpu.dot_dimension_numbers<[1], [0], [0], [1], [0, 0, 1, 1], [], []>} : vector<3x32xf32>, vector<32x512xf32>, vector<3x512xf32> -> vector<3x512xf32>
    %c0_13 = arith.constant 0 : index
    %c0_14 = arith.constant 0 : index
    %29 = vector.load %arg6[%c0_13, %c0_14] : memref<3x1xf32, #tpu.memory_space<vmem>>, vector<3x1xf32>
    %30 = vector.broadcast %29 : vector<3x1xf32> to vector<3x512xf32>
    %31 = arith.addf %28, %30 : vector<3x512xf32>
    %c0_15 = arith.constant 0 : index
    %c0_16 = arith.constant 0 : index
    %32 = vector.load %arg7[%c0_15, %c0_16] : memref<3x512xf32, #tpu.memory_space<vmem>>, vector<3x512xf32>
    tpu.vector_store %arg7[%c0_15, %c0_16], %31 {strides = array<i32>} : memref<3x512xf32, #tpu.memory_space<vmem>>, vector<3x512xf32>,
    %cst_17 = arith.constant 0.323818475 : f32
    %33 = vector.broadcast %cst_17 : f32 to vector<3x512xf32>
    %34 = arith.mulf %33, %31 : vector<3x512xf32>
    %35 = arith.subf %0, %34 : vector<3x512xf32>
    %cst_18 = arith.constant 1.05694926 : f32
    %36 = vector.broadcast %cst_18 : f32 to vector<3x512xf32>
    %37 = arith.mulf %35, %36 : vector<3x512xf32>
    %cst_19 = arith.constant 1.000000e+00 : f32
    %38 = vector.broadcast %cst_19 : f32 to vector<3x512xf32>
    %39 = arith.addf %37, %38 : vector<3x512xf32>
    %cst_20 = arith.constant 1.275000e+02 : f32
    %40 = vector.broadcast %cst_20 : f32 to vector<3x512xf32>
    %41 = arith.mulf %39, %40 : vector<3x512xf32>
    %cst_21 = arith.constant 0.000000e+00 : f32
    %cst_22 = arith.constant 2.550000e+02 : f32
    %42 = vector.broadcast %cst_21 : f32 to vector<3x512xf32>
    %43 = arith.maximumf %42, %41 : vector<3x512xf32>
    %44 = vector.broadcast %cst_22 : f32 to vector<3x512xf32>
    %45 = arith.minimumf %44, %43 : vector<3x512xf32>
    %46 = math.floor %45 : vector<3x512xf32>
    %c0_23 = arith.constant 0 : index
    %c0_24 = arith.constant 0 : index
    %47 = vector.load %arg8[%c0_23, %c0_24] : memref<3x512xf32, #tpu.memory_space<vmem>>, vector<3x512xf32>
    tpu.vector_store %arg8[%c0_23, %c0_24], %46 {strides = array<i32>} : memref<3x512xf32, #tpu.memory_space<vmem>>, vector<3x512xf32>,
    return
  }
  func.func @transform_0(%arg0: i32) -> (i32, i32) {
    %c0_i32 = arith.constant 0 : i32
    %c0_i32_0 = arith.constant 0 : i32
    return %c0_i32, %arg0 : i32, i32
  }
  func.func @transform_1(%arg0: i32) -> (i32, i32) {
    %c0_i32 = arith.constant 0 : i32
    %c0_i32_0 = arith.constant 0 : i32
    %c0_i32_1 = arith.constant 0 : i32
    return %c0_i32, %c0_i32_0 : i32, i32
  }
  func.func @transform_2(%arg0: i32) -> (i32, i32) {
    %c0_i32 = arith.constant 0 : i32
    %c0_i32_0 = arith.constant 0 : i32
    %c0_i32_1 = arith.constant 0 : i32
    return %c0_i32, %c0_i32_0 : i32, i32
  }
  func.func @transform_3(%arg0: i32) -> (i32, i32) {
    %c0_i32 = arith.constant 0 : i32
    %c0_i32_0 = arith.constant 0 : i32
    %c0_i32_1 = arith.constant 0 : i32
    return %c0_i32, %c0_i32_0 : i32, i32
  }
  func.func @transform_4(%arg0: i32) -> (i32, i32) {
    %c0_i32 = arith.constant 0 : i32
    %c0_i32_0 = arith.constant 0 : i32
    %c0_i32_1 = arith.constant 0 : i32
    return %c0_i32, %c0_i32_0 : i32, i32
  }
  func.func @transform_5(%arg0: i32) -> (i32, i32) {
    %c0_i32 = arith.constant 0 : i32
    %c0_i32_0 = arith.constant 0 : i32
    %c0_i32_1 = arith.constant 0 : i32
    return %c0_i32, %c0_i32_0 : i32, i32
  }
  func.func @transform_6(%arg0: i32) -> (i32, i32) {
    %c0_i32 = arith.constant 0 : i32
    %c0_i32_0 = arith.constant 0 : i32
    return %c0_i32, %arg0 : i32, i32
  }
  func.func @transform_7(%arg0: i32) -> (i32, i32) {
    %c0_i32 = arith.constant 0 : i32
    %c0_i32_0 = arith.constant 0 : i32
    return %c0_i32, %arg0 : i32, i32
  }
}

module attributes {stable_mosaic.version = 11 : i64} {
  func.func @kernel(%arg0: i32, %arg1: memref<6x256xf32, #tpu.memory_space<vmem>>, %arg2: memref<6x256xf32, #tpu.memory_space<vmem>>, %arg3: memref<6x256xf32, #tpu.memory_space<vmem>>, %arg4: memref<6x256xf32, #tpu.memory_space<vmem>>, %arg5: memref<1x256xf32, #tpu.memory_space<vmem>>, %arg6: memref<1x256xf32, #tpu.memory_space<vmem>>, %arg7: memref<6x256xf32, #tpu.memory_space<vmem>>, %arg8: memref<6x256xf32, #tpu.memory_space<vmem>>) attributes {dimension_semantics = [#tpu.dimension_semantics<parallel>], iteration_bounds = array<i64: 1>, scalar_prefetch = 0 : i64, scratch_operands = 0 : i64, tpu.core_type = #tpu.core_type<tc>, window_params = [{transform_indices = @transform_0, window_bounds = array<i64: 6, 256>}, {transform_indices = @transform_1, window_bounds = array<i64: 6, 256>}, {transform_indices = @transform_2, window_bounds = array<i64: 6, 256>}, {transform_indices = @transform_3, window_bounds = array<i64: 6, 256>}, {pipeline_mode = #tpu.pipeline_mode<synchronous>, transform_indices = @transform_4, window_bounds = array<i64: 1, 256>}, {pipeline_mode = #tpu.pipeline_mode<synchronous>, transform_indices = @transform_5, window_bounds = array<i64: 1, 256>}, {transform_indices = @transform_6, window_bounds = array<i64: 6, 256>}, {transform_indices = @transform_7, window_bounds = array<i64: 6, 256>}]} {
    %c0 = arith.constant 0 : index
    %c0_0 = arith.constant 0 : index
    %0 = vector.load %arg1[%c0, %c0_0] : memref<6x256xf32, #tpu.memory_space<vmem>>, vector<6x256xf32>
    %c0_1 = arith.constant 0 : index
    %c0_2 = arith.constant 0 : index
    %1 = vector.load %arg2[%c0_1, %c0_2] : memref<6x256xf32, #tpu.memory_space<vmem>>, vector<6x256xf32>
    %c0_3 = arith.constant 0 : index
    %c0_4 = arith.constant 0 : index
    %2 = vector.load %arg3[%c0_3, %c0_4] : memref<6x256xf32, #tpu.memory_space<vmem>>, vector<6x256xf32>
    %c0_5 = arith.constant 0 : index
    %c0_6 = arith.constant 0 : index
    %3 = vector.load %arg4[%c0_5, %c0_6] : memref<6x256xf32, #tpu.memory_space<vmem>>, vector<6x256xf32>
    %4 = arith.mulf %0, %0 : vector<6x256xf32>
    %5 = arith.mulf %1, %1 : vector<6x256xf32>
    %6 = arith.addf %4, %5 : vector<6x256xf32>
    %7 = math.sqrt %6 : vector<6x256xf32>
    %8 = arith.mulf %2, %2 : vector<6x256xf32>
    %9 = arith.mulf %3, %3 : vector<6x256xf32>
    %10 = arith.addf %8, %9 : vector<6x256xf32>
    %11 = math.sqrt %10 : vector<6x256xf32>
    %c0_7 = arith.constant 0 : index
    %c0_8 = arith.constant 0 : index
    %12 = vector.load %arg5[%c0_7, %c0_8] : memref<1x256xf32, #tpu.memory_space<vmem>>, vector<1x256xf32>
    %cst = arith.constant 5.000000e-01 : f32
    %13 = vector.broadcast %cst : f32 to vector<1x256xf32>
    %14 = arith.cmpf ogt, %12, %13 : vector<1x256xf32>
    %c0_9 = arith.constant 0 : index
    %c0_10 = arith.constant 0 : index
    %15 = vector.load %arg6[%c0_9, %c0_10] : memref<1x256xf32, #tpu.memory_space<vmem>>, vector<1x256xf32>
    %cst_11 = arith.constant 5.000000e-01 : f32
    %16 = vector.broadcast %cst_11 : f32 to vector<1x256xf32>
    %17 = arith.cmpf ogt, %15, %16 : vector<1x256xf32>
    %18 = vector.shape_cast %14 : vector<1x256xi1> to vector<1x256xi1>
    %19 = vector.broadcast %18 : vector<1x256xi1> to vector<6x256xi1>
    %20 = arith.select %19, %7, %11 : vector<6x256xi1>, vector<6x256xf32>
    %cst_12 = arith.constant 0.000000e+00 : f32
    %21 = vector.broadcast %cst_12 : f32 to vector<6x256xf32>
    %22 = arith.cmpf ogt, %7, %21 : vector<6x256xf32>
    %cst_13 = arith.constant 1.000000e+00 : f32
    %23 = vector.broadcast %cst_13 : f32 to vector<6x256xf32>
    %24 = arith.select %22, %7, %23 : vector<6x256xi1>, vector<6x256xf32>
    %cst_14 = arith.constant 0.000000e+00 : f32
    %25 = vector.broadcast %cst_14 : f32 to vector<6x256xf32>
    %26 = arith.cmpf ogt, %11, %25 : vector<6x256xf32>
    %cst_15 = arith.constant 1.000000e+00 : f32
    %27 = vector.broadcast %cst_15 : f32 to vector<6x256xf32>
    %28 = arith.select %26, %11, %27 : vector<6x256xi1>, vector<6x256xf32>
    %cst_16 = arith.constant 0.000000e+00 : f32
    %29 = vector.broadcast %cst_16 : f32 to vector<6x256xf32>
    %30 = arith.cmpf ogt, %7, %29 : vector<6x256xf32>
    %31 = arith.divf %0, %24 : vector<6x256xf32>
    %cst_17 = arith.constant 1.000000e+00 : f32
    %32 = vector.broadcast %cst_17 : f32 to vector<6x256xf32>
    %33 = arith.select %30, %31, %32 : vector<6x256xi1>, vector<6x256xf32>
    %cst_18 = arith.constant 0.000000e+00 : f32
    %34 = vector.broadcast %cst_18 : f32 to vector<6x256xf32>
    %35 = arith.cmpf ogt, %7, %34 : vector<6x256xf32>
    %36 = arith.divf %1, %24 : vector<6x256xf32>
    %cst_19 = arith.constant 0.000000e+00 : f32
    %37 = vector.broadcast %cst_19 : f32 to vector<6x256xf32>
    %38 = arith.select %35, %36, %37 : vector<6x256xi1>, vector<6x256xf32>
    %cst_20 = arith.constant 0.000000e+00 : f32
    %39 = vector.broadcast %cst_20 : f32 to vector<6x256xf32>
    %40 = arith.cmpf ogt, %11, %39 : vector<6x256xf32>
    %41 = arith.divf %2, %28 : vector<6x256xf32>
    %cst_21 = arith.constant 1.000000e+00 : f32
    %42 = vector.broadcast %cst_21 : f32 to vector<6x256xf32>
    %43 = arith.select %40, %41, %42 : vector<6x256xi1>, vector<6x256xf32>
    %cst_22 = arith.constant 0.000000e+00 : f32
    %44 = vector.broadcast %cst_22 : f32 to vector<6x256xf32>
    %45 = arith.cmpf ogt, %11, %44 : vector<6x256xf32>
    %46 = arith.divf %3, %28 : vector<6x256xf32>
    %cst_23 = arith.constant 0.000000e+00 : f32
    %47 = vector.broadcast %cst_23 : f32 to vector<6x256xf32>
    %48 = arith.select %45, %46, %47 : vector<6x256xi1>, vector<6x256xf32>
    %49 = vector.shape_cast %17 : vector<1x256xi1> to vector<1x256xi1>
    %50 = vector.broadcast %49 : vector<1x256xi1> to vector<6x256xi1>
    %51 = arith.select %50, %33, %43 : vector<6x256xi1>, vector<6x256xf32>
    %52 = vector.shape_cast %17 : vector<1x256xi1> to vector<1x256xi1>
    %53 = vector.broadcast %52 : vector<1x256xi1> to vector<6x256xi1>
    %54 = arith.select %53, %38, %48 : vector<6x256xi1>, vector<6x256xf32>
    %55 = arith.mulf %20, %51 : vector<6x256xf32>
    %c0_24 = arith.constant 0 : index
    %c0_25 = arith.constant 0 : index
    %56 = vector.load %arg7[%c0_24, %c0_25] : memref<6x256xf32, #tpu.memory_space<vmem>>, vector<6x256xf32>
    tpu.vector_store %arg7[%c0_24, %c0_25], %55 {strides = array<i32>} : memref<6x256xf32, #tpu.memory_space<vmem>>, vector<6x256xf32>,
    %57 = arith.mulf %20, %54 : vector<6x256xf32>
    %c0_26 = arith.constant 0 : index
    %c0_27 = arith.constant 0 : index
    %58 = vector.load %arg8[%c0_26, %c0_27] : memref<6x256xf32, #tpu.memory_space<vmem>>, vector<6x256xf32>
    tpu.vector_store %arg8[%c0_26, %c0_27], %57 {strides = array<i32>} : memref<6x256xf32, #tpu.memory_space<vmem>>, vector<6x256xf32>,
    return
  }
  func.func @transform_0(%arg0: i32) -> (i32, i32) {
    %c0_i32 = arith.constant 0 : i32
    %c0_i32_0 = arith.constant 0 : i32
    return %arg0, %c0_i32 : i32, i32
  }
  func.func @transform_1(%arg0: i32) -> (i32, i32) {
    %c0_i32 = arith.constant 0 : i32
    %c0_i32_0 = arith.constant 0 : i32
    return %arg0, %c0_i32 : i32, i32
  }
  func.func @transform_2(%arg0: i32) -> (i32, i32) {
    %c0_i32 = arith.constant 0 : i32
    %c0_i32_0 = arith.constant 0 : i32
    return %arg0, %c0_i32 : i32, i32
  }
  func.func @transform_3(%arg0: i32) -> (i32, i32) {
    %c0_i32 = arith.constant 0 : i32
    %c0_i32_0 = arith.constant 0 : i32
    return %arg0, %c0_i32 : i32, i32
  }
  func.func @transform_4(%arg0: i32) -> (i32, i32) {
    %c0_i32 = arith.constant 0 : i32
    %c0_i32_0 = arith.constant 0 : i32
    %c0_i32_1 = arith.constant 0 : i32
    return %c0_i32, %c0_i32_0 : i32, i32
  }
  func.func @transform_5(%arg0: i32) -> (i32, i32) {
    %c0_i32 = arith.constant 0 : i32
    %c0_i32_0 = arith.constant 0 : i32
    %c0_i32_1 = arith.constant 0 : i32
    return %c0_i32, %c0_i32_0 : i32, i32
  }
  func.func @transform_6(%arg0: i32) -> (i32, i32) {
    %c0_i32 = arith.constant 0 : i32
    %c0_i32_0 = arith.constant 0 : i32
    return %arg0, %c0_i32 : i32, i32
  }
  func.func @transform_7(%arg0: i32) -> (i32, i32) {
    %c0_i32 = arith.constant 0 : i32
    %c0_i32_0 = arith.constant 0 : i32
    return %arg0, %c0_i32 : i32, i32
  }
}

module attributes {stable_mosaic.version = 11 : i64} {
  func.func @kernel(%arg0: i32, %arg1: memref<6x256xf32, #tpu.memory_space<vmem>>, %arg2: memref<6x256xf32, #tpu.memory_space<vmem>>, %arg3: memref<6x256xf32, #tpu.memory_space<vmem>>) attributes {dimension_semantics = [#tpu.dimension_semantics<parallel>], iteration_bounds = array<i64: 1>, scalar_prefetch = 0 : i64, scratch_operands = 0 : i64, tpu.core_type = #tpu.core_type<tc>, window_params = [{transform_indices = @transform_0, window_bounds = array<i64: 6, 256>}, {transform_indices = @transform_1, window_bounds = array<i64: 6, 256>}, {transform_indices = @transform_2, window_bounds = array<i64: 6, 256>}]} {
    %c0 = arith.constant 0 : index
    %c0_0 = arith.constant 0 : index
    %0 = vector.load %arg1[%c0, %c0_0] : memref<6x256xf32, #tpu.memory_space<vmem>>, vector<6x256xf32>
    %cst = arith.constant 0.000000e+00 : f32
    %cst_1 = arith.constant 2.550000e+02 : f32
    %1 = vector.broadcast %cst : f32 to vector<6x256xf32>
    %2 = arith.maximumf %1, %0 : vector<6x256xf32>
    %3 = vector.broadcast %cst_1 : f32 to vector<6x256xf32>
    %4 = arith.minimumf %3, %2 : vector<6x256xf32>
    %cst_2 = arith.constant 0.00784313772 : f32
    %5 = vector.broadcast %cst_2 : f32 to vector<6x256xf32>
    %6 = arith.mulf %4, %5 : vector<6x256xf32>
    %cst_3 = arith.constant 1.000000e+00 : f32
    %7 = vector.broadcast %cst_3 : f32 to vector<6x256xf32>
    %8 = arith.subf %6, %7 : vector<6x256xf32>
    %cst_4 = arith.constant 0.999949991 : f32
    %9 = vector.broadcast %cst_4 : f32 to vector<6x256xf32>
    %10 = arith.mulf %9, %8 : vector<6x256xf32>
    %c0_5 = arith.constant 0 : index
    %c0_6 = arith.constant 0 : index
    %11 = vector.load %arg2[%c0_5, %c0_6] : memref<6x256xf32, #tpu.memory_space<vmem>>, vector<6x256xf32>
    %cst_7 = arith.constant 0.00999999977 : f32
    %12 = vector.broadcast %cst_7 : f32 to vector<6x256xf32>
    %13 = arith.mulf %12, %11 : vector<6x256xf32>
    %14 = arith.addf %10, %13 : vector<6x256xf32>
    %c0_8 = arith.constant 0 : index
    %c0_9 = arith.constant 0 : index
    %15 = vector.load %arg3[%c0_8, %c0_9] : memref<6x256xf32, #tpu.memory_space<vmem>>, vector<6x256xf32>
    tpu.vector_store %arg3[%c0_8, %c0_9], %14 {strides = array<i32>} : memref<6x256xf32, #tpu.memory_space<vmem>>, vector<6x256xf32>,
    return
  }
  func.func @transform_0(%arg0: i32) -> (i32, i32) {
    %c0_i32 = arith.constant 0 : i32
    %c0_i32_0 = arith.constant 0 : i32
    return %arg0, %c0_i32 : i32, i32
  }
  func.func @transform_1(%arg0: i32) -> (i32, i32) {
    %c0_i32 = arith.constant 0 : i32
    %c0_i32_0 = arith.constant 0 : i32
    return %arg0, %c0_i32 : i32, i32
  }
  func.func @transform_2(%arg0: i32) -> (i32, i32) {
    %c0_i32 = arith.constant 0 : i32
    %c0_i32_0 = arith.constant 0 : i32
    return %arg0, %c0_i32 : i32, i32
  }
}

module attributes {stable_mosaic.version = 11 : i64} {
  func.func @kernel(%arg0: i32, %arg1: memref<2x768xf32, #tpu.memory_space<vmem>>, %arg2: memref<768x128xf32, #tpu.memory_space<vmem>>, %arg3: memref<1x128xf32, #tpu.memory_space<vmem>>, %arg4: memref<2x128xf32, #tpu.memory_space<vmem>>) attributes {dimension_semantics = [#tpu.dimension_semantics<arbitrary>], iteration_bounds = array<i64: 1>, scalar_prefetch = 0 : i64, scratch_operands = 0 : i64, tpu.core_type = #tpu.core_type<tc>, window_params = [{pipeline_mode = #tpu.pipeline_mode<synchronous>, transform_indices = @transform_0, window_bounds = array<i64: 2, 768>}, {pipeline_mode = #tpu.pipeline_mode<synchronous>, transform_indices = @transform_1, window_bounds = array<i64: 768, 128>}, {pipeline_mode = #tpu.pipeline_mode<synchronous>, transform_indices = @transform_2, window_bounds = array<i64: 1, 128>}, {pipeline_mode = #tpu.pipeline_mode<synchronous>, transform_indices = @transform_3, window_bounds = array<i64: 2, 128>}]} {
    %c0 = arith.constant 0 : index
    %c0_0 = arith.constant 0 : index
    %0 = vector.load %arg1[%c0, %c0_0] : memref<2x768xf32, #tpu.memory_space<vmem>>, vector<2x768xf32>
    %cst = arith.constant 1.000000e+00 : f32
    %1 = vector.broadcast %cst : f32 to vector<2x768xf32>
    %2 = arith.addf %0, %1 : vector<2x768xf32>
    %cst_1 = arith.constant 5.000000e-01 : f32
    %3 = vector.broadcast %cst_1 : f32 to vector<2x768xf32>
    %4 = arith.mulf %2, %3 : vector<2x768xf32>
    %c0_2 = arith.constant 0 : index
    %c0_3 = arith.constant 0 : index
    %5 = vector.load %arg2[%c0_2, %c0_3] : memref<768x128xf32, #tpu.memory_space<vmem>>, vector<768x128xf32>
    %cst_4 = arith.constant dense<0.000000e+00> : vector<2x128xf32>
    %6 = tpu.matmul %4, %5, %cst_4 {dimension_numbers = #tpu.dot_dimension_numbers<[1], [0], [0], [1], [0, 0, 1, 1], [], []>} : vector<2x768xf32>, vector<768x128xf32>, vector<2x128xf32> -> vector<2x128xf32>
    %c0_5 = arith.constant 0 : index
    %c0_6 = arith.constant 0 : index
    %7 = vector.load %arg3[%c0_5, %c0_6] : memref<1x128xf32, #tpu.memory_space<vmem>>, vector<1x128xf32>
    %8 = vector.broadcast %7 : vector<1x128xf32> to vector<2x128xf32>
    %9 = arith.addf %6, %8 : vector<2x128xf32>
    %c0_7 = arith.constant 0 : index
    %c0_8 = arith.constant 0 : index
    %10 = vector.load %arg4[%c0_7, %c0_8] : memref<2x128xf32, #tpu.memory_space<vmem>>, vector<2x128xf32>
    tpu.vector_store %arg4[%c0_7, %c0_8], %9 {strides = array<i32>} : memref<2x128xf32, #tpu.memory_space<vmem>>, vector<2x128xf32>,
    return
  }
  func.func @transform_0(%arg0: i32) -> (i32, i32) {
    %c0_i32 = arith.constant 0 : i32
    %c0_i32_0 = arith.constant 0 : i32
    %c0_i32_1 = arith.constant 0 : i32
    return %c0_i32, %c0_i32_0 : i32, i32
  }
  func.func @transform_1(%arg0: i32) -> (i32, i32) {
    %c0_i32 = arith.constant 0 : i32
    %c0_i32_0 = arith.constant 0 : i32
    %c0_i32_1 = arith.constant 0 : i32
    return %c0_i32, %c0_i32_0 : i32, i32
  }
  func.func @transform_2(%arg0: i32) -> (i32, i32) {
    %c0_i32 = arith.constant 0 : i32
    %c0_i32_0 = arith.constant 0 : i32
    %c0_i32_1 = arith.constant 0 : i32
    return %c0_i32, %c0_i32_0 : i32, i32
  }
  func.func @transform_3(%arg0: i32) -> (i32, i32) {
    %c0_i32 = arith.constant 0 : i32
    %c0_i32_0 = arith.constant 0 : i32
    %c0_i32_1 = arith.constant 0 : i32
    return %c0_i32, %c0_i32_0 : i32, i32
  }
}

</mosaic_0001>

<bundles_post_ra>
// kernel: _forward_impl.5
= control target key start
LH: loop header
LB: loop body
LE: loop exit
PB: predicated region body
PF: predicated region fallthrough
CT: control target
= control target key end

     0   :  { %s93_s0 = inlined_call_operand.vmem [shape: f32[6,256], index: 0, kind: input, shape index: {}]   ;;  %s94_s1 = inlined_call_operand.vmem [shape: f32[6,256], index: 1, kind: input, shape index: {}]   ;;  %s95_s2 = inlined_call_operand.vmem [shape: f32[6,256], index: 2, kind: output, shape index: {0}]   ;;  %s96_s3 = inlined_call_operand.vmem [shape: f32[6,256], index: 3, kind: output, shape index: {1}]  }
   0x1   :  { %v13_v0 = vld [vmem:[%s93_s0] sm:$0x3f]  ;;  %v14_v2 = vld [vmem:[%s93_s0 + $0x8] sm:$0x3f] }
   0x2   :  { %v21_v1 = vld [vmem:[%s94_s1] sm:$0x3f]  ;;  %v15_v3 = vmul.f32 2.0, %v13_v0  ;;  %v16_v4 = vmul.f32 2.0, %v14_v2  ;;  %v22_v5 = vld [vmem:[%s94_s1 + $0x8] sm:$0x3f] }
   0x3   :  { %v29_v6 = vmul.f32 255.0, %v13_v0  ;;  %v30_v7 = vmul.f32 255.0, %v14_v2  ;;  %v23_v9 = vmul.f32 0.32381848, %v21_v1  ;;  %v24_v11 = vmul.f32 0.32381848, %v22_v5 }
   0x4   :  { %v47_v8 = vadd.f32 -1.0, %v15_v3  ;;  %v48_v10 = vadd.f32 -1.0, %v16_v4 }
   0x5   :  { %v31_v12 = vmax.f32 %v29_v6, 0.0  ;;  %v32_v13 = vmax.f32 %v30_v7, 0.0 }
   0x6   :  { %v19_v14 = vmul.f32 0.94611925, %v47_v8  ;;  %v20_v15 = vmul.f32 0.94611925, %v48_v10 }
   0x7   :  { %v33_v16 = vmin.f32 %v31_v12, 255.0  ;;  %v34_v17 = vmin.f32 %v32_v13, 255.0 }
   0x8   :  { %v25_v18 = vadd.f32 %v23_v9, %v19_v14  ;;  %v26_v19 = vadd.f32 %v24_v11, %v20_v15 }
   0x9   :  { %v35_v20 = vfloor.f32 %v33_v16  ;;  %v36_v21 = vfloor.f32 %v34_v17 }
   0xa   :  { %27 = vst [vmem:[%s95_s2] sm:$0x3f] %v25_v18 }
   0xb   :  { %28 = vst [vmem:[%s95_s2 + $0x8] sm:$0x3f] %v26_v19 }
   0xc   :  { %37 = vst [vmem:[%s96_s3] sm:$0x3f] %v35_v20 }
   0xd   :  { %38 = vst [vmem:[%s96_s3 + $0x8] sm:$0x3f] %v36_v21 }

// kernel: _forward_impl.7
= control target key start
LH: loop header
LB: loop body
LE: loop exit
PB: predicated region body
PF: predicated region fallthrough
CT: control target
= control target key end

     0   :  { %v226_v49 = vmov 0   ;;  %s495_s0 = inlined_call_operand.vmem [shape: f32[6,256], index: 0, kind: input, shape index: {}]   ;;  %s496_s1 = inlined_call_operand.vmem [shape: f32[6,256], index: 1, kind: input, shape index: {}]   ;;  %s497_s2 = inlined_call_operand.vmem [shape: f32[6,256], index: 2, kind: input, shape index: {}]   ;;  %s498_s3 = inlined_call_operand.vmem [shape: f32[6,256], index: 3, kind: input, shape index: {}]   ;;  %s499_s4 = inlined_call_operand.vmem [shape: f32[1,256], index: 4, kind: input, shape index: {}, may-alias: {4,5}]   ;;  %s500_s5 = inlined_call_operand.vmem [shape: f32[1,256], index: 5, kind: input, shape index: {}, may-alias: {4,5}]   ;;  %s501_s6 = inlined_call_operand.vmem [shape: f32[6,256], index: 6, kind: output, shape index: {0}]   ;;  %s502_s7 = inlined_call_operand.vmem [shape: f32[6,256], index: 7, kind: output, shape index: {1}]  }
   0x1   :  { %v270_v0 = vld [vmem:[%s495_s0] sm:$0x3f]  ;;  %v298_v8 = vld [vmem:[%s495_s0 + $0x8] sm:$0x3f] }
   0x2   :  { %v275_v1 = vld [vmem:[%s496_s1] sm:$0x3f]  ;;  %v33_v4 = vmul.f32 %v270_v0, %v270_v0  ;;  %v303_v9 = vld [vmem:[%s496_s1 + $0x8] sm:$0x3f]  ;;  %v34_v13 = vmul.f32 %v298_v8, %v298_v8 }
   0x3   :  { %v280_v2 = vld [vmem:[%s497_s2] sm:$0x3f]  ;;  %v35_v5 = vmul.f32 %v275_v1, %v275_v1  ;;  %v308_v11 = vld [vmem:[%s497_s2 + $0x8] sm:$0x3f]  ;;  %v36_v14 = vmul.f32 %v303_v9, %v303_v9 }
   0x4   :  { %v285_v3 = vld [vmem:[%s498_s3] sm:$0x3f]  ;;  %v63_v6 = vmul.f32 %v280_v2, %v280_v2  ;;  %v313_v12 = vld [vmem:[%s498_s3 + $0x8] sm:$0x3f]  ;;  %v64_v16 = vmul.f32 %v308_v11, %v308_v11 }
   0x5   :  { %v65_v7 = vmul.f32 %v285_v3, %v285_v3  ;;  %v37_v10 = vadd.f32 %v35_v5, %v33_v4  ;;  %v66_v17 = vmul.f32 %v313_v12, %v313_v12  ;;  %v323_v18 = vadd.f32 %v36_v14, %v34_v13  ;;  %v93_v31 = vld [vmem:[%s499_s4] sm:$0x3] }
   0x6   :  { %vm94_vm1 = vcmp.gt.f32.partialorder %v93_v31, 0.5  ;;  %v95_v38 = vld [vmem:[%s500_s5] sm:$0x3] }
   0x7   :  { %v67_v15 = vadd.f32 %v65_v7, %v63_v6  ;;  %210 = vrsqrt.f32 %v37_v10  ;;  %v325_v19 = vadd.f32 %v66_v17, %v64_v16  ;;  %vm46_vm0 = vcmp.eq.f32.partialorder %v37_v10, inf }
   0x8   :  { %vm48_vm2 = vcmp.eq.f32.partialorder %v37_v10, 0.0  ;;  %v49_v40 = vand.u32 2147483648, %v37_v10  ;;  %vm96_vm5 = vcmp.gt.f32.partialorder %v95_v38, 0.5  ;;  %v339_v50 = vsel %vm94_vm1, 1, %v226_v49 }
   0x9   :  { %212 = vrsqrt.f32 %v67_v15  ;;  %vm76_vm3 = vcmp.eq.f32.partialorder %v67_v15, inf  ;;  %v79_v44 = vand.u32 2147483648, %v67_v15  ;;  %vm78_vm4 = vcmp.eq.f32.partialorder %v67_v15, 0.0 }
   0xa   :  { %214 = vrsqrt.f32 %v323_v18  ;;  %vm58_vm6 = vcmp.eq.f32.partialorder %v323_v18, inf  ;;  %v61_v54 = vand.u32 2147483648, %v323_v18  ;;  %vm88_vm8 = vcmp.eq.f32.partialorder %v325_v19, inf }
   0xb   :  { %216 = vrsqrt.f32 %v325_v19  ;;  %v91_v60 = vand.u32 2147483648, %v325_v19  ;;  %vm60_vm10 = vcmp.eq.f32.partialorder %v323_v18, 0.0  ;;  %vm90_vm11 = vcmp.eq.f32.partialorder %v325_v19, 0.0 }
   0xc   :  { %v98_v62 = vperm.slane %v339_v50, 0  ;;  %v368_v5 = vsel %vm96_vm5, 1, %v226_v49 }
   0xd   :  { %v211_v20 = vpop.eup %210  ;;  %v185_v16 = vperm.slane %v368_v5, 0 }
   0xe   :  { %v40_v22 = vmul.f32 %v211_v20, %v37_v10  ;;  %vm384_vm14 = vcmp.eq.s32.totalorder %v98_v62, 1 }
   0xf   :  { %v213_v21 = vpop.eup %212 }
  0x10   :  { %v70_v23 = vmul.f32 %v213_v21, %v67_v15  ;;  %v41_v24 = vmul.f32 %v211_v20, %v40_v22  ;;  %v215_v25 = vpop.eup %214 }
  0x11   :  { %v217_v27 = vpop.eup %216  ;;  %v52_v29 = vmul.f32 %v215_v25, %v323_v18 }
  0x12   :  { %v71_v26 = vmul.f32 %v213_v21, %v70_v23  ;;  %v42_v28 = vmul.f32 0.5, %v41_v24  ;;  %v82_v32 = vmul.f32 %v217_v27, %v325_v19  ;;  %v99_v24 = vperm.slane %v339_v50, 1 }
  0x13   :  { %v53_v34 = vmul.f32 %v215_v25, %v52_v29 }
  0x14   :  { %v72_v30 = vmul.f32 0.5, %v71_v26  ;;  %v43_v33 = vsub.f32 1.5, %v42_v28  ;;  %v83_v36 = vmul.f32 %v217_v27, %v82_v32  ;;  %v186_v26 = vperm.slane %v368_v5, 1 }
  0x15   :  { %v54_v39 = vmul.f32 0.5, %v53_v34 }
  0x16   :  { %v73_v35 = vsub.f32 1.5, %v72_v30  ;;  %v44_v37 = vmul.f32 %v211_v20, %v43_v33  ;;  %v84_v42 = vmul.f32 0.5, %v83_v36 }
  0x17   :  { %v55_v45 = vsub.f32 1.5, %v54_v39 }
  0x18   :  { %v74_v41 = vmul.f32 %v213_v21, %v73_v35  ;;  %v45_v43 = vmul.f32 %v44_v37, %v37_v10  ;;  %v85_v47 = vsub.f32 1.5, %v84_v42 }
  0x19   :  { %v56_v51 = vmul.f32 %v215_v25, %v55_v45 }
  0x1a   :  { %v75_v46 = vmul.f32 %v74_v41, %v67_v15  ;;  %v47_v48 = vsel %vm46_vm0, %v37_v10, %v45_v43  ;;  %v86_v55 = vmul.f32 %v217_v27, %v85_v47 }
  0x1b   :  { %v343_v52 = vsel %vm48_vm2, %v49_v40, %v47_v48  ;;  %v57_v57 = vmul.f32 %v56_v51, %v323_v18 }
  0x1c   :  { %v77_v53 = vsel %vm76_vm3, %v67_v15, %v75_v46  ;;  %vm104_vm7 = vcmp.gt.f32.partialorder %v343_v52, 0.0  ;;  %v87_v59 = vmul.f32 %v86_v55, %v325_v19  ;;  %vm392_vm3 = vcmp.eq.s32.totalorder %v185_v16, 1 }
  0x1d   :  { %v346_v56 = vsel %vm78_vm4, %v79_v44, %v77_v53  ;;  %v106_v58 = vsel %vm104_vm7, %v343_v52, 1.0  ;;  %v59_v63 = vsel %vm58_vm6, %v323_v18, %v57_v57 }
  0x1e   :  { %vm108_vm9 = vcmp.gt.f32.partialorder %v346_v56, 0.0  ;;  %218 = vrcp.f32 %v106_v58  ;;  %v89_v4 = vsel %vm88_vm8, %v325_v19, %v87_v59  ;;  %v370_v6 = vsel %vm60_vm10, %v61_v54, %v59_v63 }
  0x1f   :  { %v110_v61 = vsel %vm108_vm9, %v346_v56, 1.0  ;;  %v372_v7 = vsel %vm90_vm11, %v91_v60, %v89_v4  ;;  %vm105_vm12 = vcmp.gt.f32.partialorder %v370_v6, 0.0  ;;  %v121_v19 = vand.u32 2147483647, %v106_v58 }
  0x20   :  { %220 = vrcp.f32 %v110_v61  ;;  %vm109_vm13 = vcmp.gt.f32.partialorder %v372_v7, 0.0  ;;  %v107_v10 = vsel %vm105_vm12, %v370_v6, 1.0  ;;  %v123_v20 = vand.u32 2147483648, %v106_v58 }
  0x21   :  { %v382_v13 = vsel %vm109_vm13, %v372_v7, 1.0  ;;  %222 = vrcp.f32 %v107_v10  ;;  %v157_v22 = vand.u32 2147483647, %v110_v61  ;;  %v159_v23 = vand.u32 2147483648, %v110_v61 }
  0x22   :  { %224 = vrcp.f32 %v382_v13  ;;  %vm117_vm15 = vweird.f32 %v106_v58  ;;  %vm153_vm1 = vweird.f32 %v110_v61  ;;  %v136_v29 = vand.u32 2147483647, %v107_v10 }
  0x23   :  { %v102_v30 = vsel %vm384_vm14, %v343_v52, %v346_v56  ;;  %vm400_vm4 = vcmp.eq.f32.partialorder %v121_v19, 8.507059e+37  ;;  %v124_v33 = vor.u32 1.1754944e-38, %v123_v20  ;;  %vm408_vm6 = vcmp.eq.f32.partialorder %v157_v22, 8.507059e+37 }
  0x24   :  { %v219_v14 = vpop.eup %218  ;;  %v160_v38 = vor.u32 1.1754944e-38, %v159_v23  ;;  %vm132_vm8 = vweird.f32 %v107_v10  ;;  %v138_v43 = vand.u32 2147483648, %v107_v10  ;;  %vm168_vm11 = vweird.f32 %v382_v13 }
  0x25   :  { %v113_v18 = vmul.f32 %v219_v14, %v106_v58  ;;  %vm118_vm0 = vweird.f32 %v219_v14  ;;  %vm419_vm14 = vcmp.eq.f32.partialorder %v136_v29, 8.507059e+37  ;;  %v172_v47 = vand.u32 2147483647, %v382_v13 }
  0x26   :  { %v221_v17 = vpop.eup %220  ;;  %vm404_vm5 = vmor %vm117_vm15, %vm118_vm0  ;;  %v174_v50 = vand.u32 2147483648, %v382_v13  ;;  %v139_v62 = vor.u32 1.1754944e-38, %v138_v43 }
  0x27   :  { %v149_v21 = vmul.f32 %v221_v17, %v110_v61  ;;  %v114_v25 = vsub.f32 1.0, %v113_v18  ;;  %vm154_vm2 = vweird.f32 %v221_v17  ;;  %v223_v34 = vpop.eup %222 }
  0x28   :  { %v225_v39 = vpop.eup %224  ;;  %vm414_vm10 = vmor %vm153_vm1, %vm154_vm2  ;;  %v128_v42 = vmul.f32 %v223_v34, %v107_v10  ;;  %vm133_vm15 = vweird.f32 %v223_v34 }
  0x29   :  { %v150_v27 = vsub.f32 1.0, %v149_v21  ;;  %v115_v31 = vmul.f32 %v219_v14, %v114_v25  ;;  %v164_v46 = vmul.f32 %v225_v39, %v382_v13  ;;  %vm169_vm0 = vweird.f32 %v225_v39  ;;  %vm438_vm1 = vmor %vm132_vm8, %vm133_vm15 }
  0x2a   :  { %v129_v49 = vsub.f32 1.0, %v128_v42  ;;  %vm447_vm2 = vmor %vm168_vm11, %vm169_vm0 }
  0x2b   :  { %v151_v36 = vmul.f32 %v221_v17, %v150_v27  ;;  %v116_v40 = vadd.f32 %v219_v14, %v115_v31  ;;  %v165_v54 = vsub.f32 1.0, %v164_v46 }
  0x2c   :  { %v130_v58 = vmul.f32 %v223_v34, %v129_v49 }
  0x2d   :  { %v152_v44 = vadd.f32 %v221_v17, %v151_v36  ;;  %v120_v48 = vsel %vm404_vm5, %v219_v14, %v116_v40  ;;  %v166_v63 = vmul.f32 %v225_v39, %v165_v54  ;;  %vm101_vm5 = vcmp.eq.s32.totalorder %v99_v24, 1 }
  0x2e   :  { %v125_v51 = vsel %vm400_vm4, %v124_v33, %v120_v48  ;;  %v131_v14 = vadd.f32 %v223_v34, %v130_v58  ;;  %vm173_vm4 = vcmp.eq.f32.partialorder %v172_v47, 8.507059e+37  ;;  %v103_v27 = vsel %vm101_vm5, %v370_v6, %v372_v7 }
  0x2f   :  { %v156_v53 = vsel %vm414_vm10, %v221_v17, %v152_v44  ;;  %v126_v55 = vmul.f32 %v125_v51, %v270_v0  ;;  %v144_v59 = vmul.f32 %v125_v51, %v275_v1  ;;  %v175_v1 = vor.u32 1.1754944e-38, %v174_v50 }
  0x30   :  { %v161_v57 = vsel %vm408_vm6, %v160_v38, %v156_v53  ;;  %v167_v16 = vadd.f32 %v225_v39, %v166_v63  ;;  %v135_v13 = vsel %vm438_vm1, %v223_v34, %v131_v14 }
  0x31   :  { %v162_v60 = vmul.f32 %v161_v57, %v280_v2  ;;  %v180_v4 = vmul.f32 %v161_v57, %v285_v3  ;;  %v142_v0 = vsel %vm104_vm7, %v126_v55, 1.0  ;;  %v146_v2 = vsel %vm104_vm7, %v144_v59, 0.0 }
  0x32   :  { %v140_v19 = vsel %vm419_vm14, %v139_v62, %v135_v13  ;;  %v171_v20 = vsel %vm447_vm2, %v225_v39, %v167_v16  ;;  %vm188_vm7 = vcmp.eq.s32.totalorder %v186_v26, 1 }
  0x33   :  { %v178_v10 = vsel %vm108_vm9, %v162_v60, 1.0  ;;  %v182_v3 = vsel %vm108_vm9, %v180_v4, 0.0  ;;  %v141_v56 = vmul.f32 %v140_v19, %v298_v8  ;;  %v176_v22 = vsel %vm173_vm4, %v175_v1, %v171_v20 }
  0x34   :  { %v189_v17 = vsel %vm392_vm3, %v142_v0, %v178_v10  ;;  %v191_v18 = vsel %vm392_vm3, %v146_v2, %v182_v3  ;;  %v145_v23 = vmul.f32 %v140_v19, %v303_v9  ;;  %v177_v24 = vmul.f32 %v176_v22, %v308_v11 }
  0x35   :  { %v193_v52 = vmul.f32 %v189_v17, %v102_v30  ;;  %v197_v21 = vmul.f32 %v191_v18, %v102_v30  ;;  %v181_v25 = vmul.f32 %v176_v22, %v313_v12  ;;  %v143_v8 = vsel %vm105_vm12, %v141_v56, 1.0 }
  0x36   :  { %v147_v9 = vsel %vm105_vm12, %v145_v23, 0.0  ;;  %v179_v11 = vsel %vm109_vm13, %v177_v24, 1.0 }
  0x37   :  { %195 = vst [vmem:[%s501_s6] sm:$0x3f] %v193_v52  ;;  %v183_v5 = vsel %vm109_vm13, %v181_v25, 0.0  ;;  %v190_v12 = vsel %vm188_vm7, %v143_v8, %v179_v11 }
  0x38   :  { %199 = vst [vmem:[%s502_s7] sm:$0x3f] %v197_v21  ;;  %v192_v26 = vsel %vm188_vm7, %v147_v9, %v183_v5  ;;  %v194_v28 = vmul.f32 %v190_v12, %v103_v27 }
  0x39   :  { %v198_v29 = vmul.f32 %v192_v26, %v103_v27 }
  0x3a   :  { %196 = vst [vmem:[%s501_s6 + $0x8] sm:$0x3f] %v194_v28 }
  0x3b   :  { %200 = vst [vmem:[%s502_s7 + $0x8] sm:$0x3f] %v198_v29 }

// kernel: _forward_impl.6
= control target key start
LH: loop header
LB: loop body
LE: loop exit
PB: predicated region body
PF: predicated region fallthrough
CT: control target
= control target key end

     0   :  { %v427_v0 = vmov 1   ;;  %v428_v1 = vmov 0   ;;  %v429_v4 = vmov 2   ;;  %vm276_vm0 = vcmask 261120   ;;  %s621_s1 = inlined_call_operand.vmem [shape: f32[32,3], index: 1, kind: input, shape index: {}]   ;;  %s622_s3 = inlined_call_operand.vmem [shape: f32[32,1], index: 3, kind: input, shape index: {}]   ;;  %s623_s2 = inlined_call_operand.vmem [shape: f32[32,1], index: 2, kind: input, shape index: {}]   ;;  %s624_s5 = inlined_call_operand.vmem [shape: f32[3,1], index: 5, kind: input, shape index: {}]   ;;  %s625_s0 = inlined_call_operand.vmem [shape: f32[3,512], index: 0, kind: input, shape index: {}]   ;;  %s626_s4 = inlined_call_operand.vmem [shape: f32[3,32], index: 4, kind: input, shape index: {}]   ;;  %s627_s6 = inlined_call_operand.vmem [shape: f32[3,512], index: 6, kind: output, shape index: {0}]   ;;  %s628_s7 = inlined_call_operand.vmem [shape: f32[3,512], index: 7, kind: output, shape index: {1}]  }
   0x1   :  { %418 = vset.pattern.permute.xlu0 %v427_v0  ;;  %420 = vset.pattern.permute.xlu1 %v428_v1  ;;  %v30_v2 = vld [vmem:[%s621_s1 + $0x18] sm:$0xff]  ;;  %v29_v3 = vld [vmem:[%s621_s1 + $0x10] sm:$0xff]  ;;  %v28_v5 = vld [vmem:[%s621_s1 + $0x8] sm:$0xff]  ;;  %vm366_vm1 = vcmask 1043456  }
   0x2   :  { %94 = vperm.xlu0 %418, %v30_v2   ;;  %43 = vperm.xlu1 %420, %v29_v3   ;;  %v27_v6 = vld [vmem:[%s621_s1] sm:$0xff]  ;;  %v203_v7 = vld [vmem:[%s622_s3 + $0x10] sm:$0xff]  ;;  %v204_v11 = vld [vmem:[%s622_s3 + $0x18] sm:$0xff] }
   0x3   :  { %422 = vset.pattern.permute.xlu2 %v429_v4  ;;  %v207_v8 = vmul.f32 0.1, %v203_v7  ;;  %v211_v9 = vld [vmem:[%s623_s2 + $0x10] sm:$0xff]  ;;  %v208_v12 = vmul.f32 0.1, %v204_v11  ;;  %v212_v13 = vld [vmem:[%s623_s2 + $0x18] sm:$0xff] }
   0x4   :  { %154 = vperm.xlu2 %422, %v30_v2   ;;  %v270_v14 = vld [vmem:[%s624_s5] sm:$0x7]  ;;  %v202_v16 = vld [vmem:[%s622_s3 + $0x8] sm:$0xff] }
   0x5   :  { %v215_v10 = vadd.f32 %v211_v9, %v207_v8  ;;  %v216_v15 = vadd.f32 %v212_v13, %v208_v12  ;;  %v206_v17 = vmul.f32 0.1, %v202_v16  ;;  %v201_v18 = vld [vmem:[%s622_s3] sm:$0xff]  ;;  %v210_v19 = vld [vmem:[%s623_s2 + $0x8] sm:$0xff] }
   0x6   :  { %v205_v20 = vmul.f32 0.1, %v201_v18  ;;  %v209_v22 = vld [vmem:[%s623_s2] sm:$0xff]  ;;  %v519_v30 = vld [vmem:[%s625_s0 + $0x8] sm:$0x77] }
   0x7   :  { %v214_v21 = vadd.f32 %v210_v19, %v206_v17  ;;  %v514_v29 = vld [vmem:[%s625_s0] sm:$0x77]  ;;  %v159_v34 = vperm.slane %v519_v30, 2  ;;  %v160_v35 = vperm.slane %v519_v30, 6  ;;  %v99_v38 = vperm.slane %v519_v30, 1 }
   0x8   :  { %v213_v23 = vadd.f32 %v209_v22, %v205_v20  ;;  %v157_v31 = vperm.slane %v514_v29, 2  ;;  %v158_v32 = vperm.slane %v514_v29, 6  ;;  %v97_v36 = vperm.slane %v514_v29, 1 }
   0x9   :  { %v98_v37 = vperm.slane %v514_v29, 5  ;;  %v100_v39 = vperm.slane %v519_v30, 5  ;;  %v53_v41 = vperm.slane %v514_v29, 0  ;;  %v54_v42 = vperm.slane %v514_v29, 4 }
   0xa   :  { %419 = vset.pattern.permute.xlu0 %v428_v1  ;;  %421 = vset.pattern.permute.xlu1 %v427_v0  ;;  %v55_v43 = vperm.slane %v519_v30, 0  ;;  %v56_v44 = vperm.slane %v519_v30, 4  ;;  %v165_v45 = vperm.slane %v157_v31, 2  ;;  %v166_v46 = vperm.slane %v158_v32, 2 }
   0xb   :  { %48 = vperm.xlu0 %419, %v30_v2   ;;  %90 = vperm.xlu1 %421, %v29_v3   ;;  %v533_v48 = vperm.slane %v159_v34, 2  ;;  %v535_v49 = vperm.slane %v160_v35, 2  ;;  %v537_v50 = vperm.slane %v97_v36, 1  ;;  %v539_v51 = vperm.slane %v98_v37, 1 }
   0xc   :  { %423 = vset.pattern.permute.xlu2 %v428_v1  ;;  %v541_v52 = vperm.slane %v99_v38, 1  ;;  %v543_v53 = vperm.slane %v100_v39, 1  ;;  %v61_v54 = vperm.slane %v53_v41, 0  ;;  %v62_v55 = vperm.slane %v54_v42, 0 }
   0xd   :  { %38 = vperm.xlu2 %423, %v28_v5   ;;  %v545_v56 = vperm.slane %v55_v43, 0  ;;  %v547_v57 = vperm.slane %v56_v44, 0 }
  0x13   :  { %86 = vperm.xlu1 %421, %v28_v5   ;;  %33 = vperm.xlu0 %419, %v27_v6  }
  0x15   :  { %424 = vset.pattern.permute.xlu2 %v429_v4 }
  0x16   :  { %150 = vperm.xlu2 %424, %v29_v3  }
  0x1b   :  { %82 = vperm.xlu1 %421, %v27_v6   ;;  %229 = vperm.xlu0 %419, %v215_v10  }
  0x1e   :  { %146 = vperm.xlu2 %424, %v28_v5  }
  0x23   :  { %425 = vset.pattern.permute.xlu1 %v428_v1  ;;  %273 = vperm.xlu0 %419, %v270_v14  }
  0x24   :  { %234 = vperm.xlu1 %425, %v216_v15  }
  0x26   :  { %142 = vperm.xlu2 %424, %v27_v6  }
  0x2c   :  { %224 = vperm.xlu1 %425, %v214_v21  }
  0x2e   :  { %426 = vset.pattern.permute.xlu2 %v428_v1 }
  0x2f   :  { %219 = vperm.xlu2 %426, %v213_v23  }
  0x5e   :  { %v155_v24 = vpop.permute.xlu2 %154 }
  0x5f   :  { %v181_v59 = vmul.f32 %v165_v45, %v155_v24  ;;  %v182_v60 = vmul.f32 %v166_v46, %v155_v24  ;;  %v183_v63 = vmul.f32 %v533_v48, %v155_v24  ;;  %v184_v0 = vmul.f32 %v535_v49, %v155_v24 }
  0x67   :  { %v39_v25 = vpop.permute.xlu2 %38 }
  0x68   :  { %v549_v61 = vmul.f32 %v61_v54, %v39_v25  ;;  %v551_v62 = vmul.f32 %v62_v55, %v39_v25  ;;  %v71_v9 = vmul.f32 %v545_v56, %v39_v25  ;;  %v72_v10 = vmul.f32 %v547_v57, %v39_v25 }
  0x70   :  { %v151_v28 = vpop.permute.xlu2 %150 }
  0x71   :  { %v177_v11 = vmul.f32 %v165_v45, %v151_v28  ;;  %v178_v12 = vmul.f32 %v166_v46, %v151_v28  ;;  %v179_v16 = vmul.f32 %v533_v48, %v151_v28  ;;  %v180_v17 = vmul.f32 %v535_v49, %v151_v28 }
  0x74   :  { %v509_v26 = vpop.permute.xlu1 %43  ;;  %v95_v27 = vpop.permute.xlu0 %94 }
  0x75   :  { %v121_v1 = vmul.f32 %v537_v50, %v95_v27  ;;  %v122_v2 = vmul.f32 %v539_v51, %v95_v27  ;;  %v123_v3 = vmul.f32 %v541_v52, %v95_v27  ;;  %v124_v4 = vmul.f32 %v543_v53, %v95_v27 }
  0x76   :  { %v73_v14 = vmul.f32 %v61_v54, %v509_v26  ;;  %v74_v15 = vmul.f32 %v62_v55, %v509_v26  ;;  %v75_v31 = vmul.f32 %v545_v56, %v509_v26  ;;  %v76_v32 = vmul.f32 %v547_v57, %v509_v26 }
  0x78   :  { %v147_v47 = vpop.permute.xlu2 %146 }
  0x79   :  { %v173_v28 = vmul.f32 %v165_v45, %v147_v47  ;;  %v575_v34 = vmul.f32 %v166_v46, %v147_v47  ;;  %v578_v36 = vmul.f32 %v533_v48, %v147_v47 }
  0x7d   :  { %v91_v33 = vpop.permute.xlu1 %90  ;;  %v49_v40 = vpop.permute.xlu0 %48 }
  0x7e   :  { %v77_v5 = vmul.f32 %v61_v54, %v49_v40  ;;  %v78_v6 = vmul.f32 %v62_v55, %v49_v40  ;;  %v79_v7 = vmul.f32 %v545_v56, %v49_v40  ;;  %v80_v8 = vmul.f32 %v547_v57, %v49_v40 }
  0x7f   :  { %v117_v18 = vmul.f32 %v537_v50, %v91_v33  ;;  %v118_v19 = vmul.f32 %v539_v51, %v91_v33  ;;  %v119_v20 = vmul.f32 %v541_v52, %v91_v33  ;;  %v120_v21 = vmul.f32 %v543_v53, %v91_v33 }
  0x80   :  { %v143_v22 = vpop.permute.xlu2 %142  ;;  %v137_v23 = vadd.f32 %v121_v1, %v77_v5  ;;  %v138_v24 = vadd.f32 %v122_v2, %v78_v6  ;;  %v139_v25 = vadd.f32 %v123_v3, %v79_v7  ;;  %v140_v27 = vadd.f32 %v124_v4, %v80_v8 }
  0x81   :  { %v581_v33 = vmul.f32 %v535_v49, %v147_v47  ;;  %v169_v37 = vmul.f32 %v165_v45, %v143_v22  ;;  %v170_v38 = vmul.f32 %v166_v46, %v143_v22  ;;  %v133_v39 = vadd.f32 %v117_v18, %v73_v14 }
  0x82   :  { %v134_v40 = vadd.f32 %v118_v19, %v74_v15  ;;  %v135_v41 = vadd.f32 %v119_v20, %v75_v31  ;;  %v136_v42 = vadd.f32 %v120_v21, %v76_v32  ;;  %v197_v43 = vadd.f32 %v181_v59, %v137_v23 }
  0x83   :  { %v198_v44 = vadd.f32 %v182_v60, %v138_v24  ;;  %v199_v1 = vadd.f32 %v183_v63, %v139_v25  ;;  %v200_v26 = vadd.f32 %v184_v0, %v140_v27  ;;  %v193_v8 = vadd.f32 %v177_v11, %v133_v39 }
  0x84   :  { %v194_v59 = vadd.f32 %v178_v12, %v134_v40  ;;  %v195_v60 = vadd.f32 %v179_v16, %v135_v41  ;;  %v196_v63 = vadd.f32 %v180_v17, %v136_v42 }
  0x85   :  { %v87_v58 = vpop.permute.xlu1 %86  ;;  %v34_v13 = vpop.permute.xlu0 %33 }
  0x86   :  { %v113_v2 = vmul.f32 %v537_v50, %v87_v58  ;;  %v114_v3 = vmul.f32 %v539_v51, %v87_v58  ;;  %v115_v4 = vmul.f32 %v541_v52, %v87_v58  ;;  %v116_v5 = vmul.f32 %v543_v53, %v87_v58 }
  0x87   :  { %v65_v47 = vmul.f32 %v61_v54, %v34_v13  ;;  %v66_v6 = vmul.f32 %v62_v55, %v34_v13  ;;  %v67_v0 = vmul.f32 %v545_v56, %v34_v13  ;;  %v68_v14 = vmul.f32 %v547_v57, %v34_v13 }
  0x88   :  { %v129_v54 = vadd.f32 %v113_v2, %v549_v61  ;;  %v130_v55 = vadd.f32 %v114_v3, %v551_v62  ;;  %v132_v58 = vadd.f32 %v116_v5, %v72_v10  ;;  %v171_v62 = vmul.f32 %v533_v48, %v143_v22 }
  0x89   :  { %v220_v31 = vpop.permute.xlu2 %219 }
  0x8a   :  { %v189_v39 = vadd.f32 %v173_v28, %v129_v54  ;;  %v190_v48 = vadd.f32 %v575_v34, %v130_v55 }
  0x8d   :  { %v83_v35 = vpop.permute.xlu1 %82  ;;  %v230_v7 = vpop.permute.xlu0 %229 }
  0x8e   :  { %v109_v45 = vmul.f32 %v537_v50, %v83_v35  ;;  %v110_v46 = vmul.f32 %v539_v51, %v83_v35  ;;  %v111_v15 = vmul.f32 %v541_v52, %v83_v35  ;;  %v112_v18 = vmul.f32 %v543_v53, %v83_v35 }
  0x8f   :  { %v131_v50 = vadd.f32 %v115_v4, %v71_v9  ;;  %v245_v19 = vadd.f32 %v230_v7, %v193_v8  ;;  %v246_v11 = vadd.f32 %v230_v7, %v194_v59  ;;  %v247_v57 = vadd.f32 %v230_v7, %v195_v60 }
  0x90   :  { %v125_v12 = vadd.f32 %v109_v45, %v65_v47  ;;  %v126_v16 = vadd.f32 %v110_v46, %v66_v6  ;;  %v248_v13 = vadd.f32 %v230_v7, %v196_v63  ;;  %v127_v52 = vadd.f32 %v111_v15, %v67_v0  ;;  %v269_v7 = vld [vmem:[%s626_s4] sm:$0x7] }
  0x91   :  { %v128_v23 = vadd.f32 %v112_v18, %v68_v14  ;;  %v172_v9 = vmul.f32 %v535_v49, %v143_v22  ;;  %v261_v32 = vmax.f32 %v245_v19, 0.0  ;;  %v262_v35 = vmax.f32 %v246_v11, 0.0 }
  0x92   :  { %v185_v10 = vadd.f32 %v169_v37, %v125_v12  ;;  %v186_v27 = vadd.f32 %v170_v38, %v126_v16  ;;  %v263_v40 = vmax.f32 %v247_v57, 0.0  ;;  %v264_v41 = vmax.f32 %v248_v13, 0.0 }
  0x93   :  { %v187_v42 = vadd.f32 %v171_v62, %v127_v52  ;;  %v191_v49 = vadd.f32 %v578_v36, %v131_v50  ;;  %v192_v22 = vadd.f32 %v581_v33, %v132_v58 }
  0x94   :  { %v237_v38 = vadd.f32 %v220_v31, %v185_v10 }
  0x95   :  { %v239_v3 = vadd.f32 %v220_v31, %v187_v42  ;;  %v274_v8 = vpop.permute.xlu0 %273 }
  0x96   :  { %v235_v51 = vpop.permute.xlu1 %234  ;;  %v253_v34 = vmax.f32 %v237_v38, 0.0 }
  0x97   :  { %v249_v17 = vadd.f32 %v235_v51, %v197_v43  ;;  %v250_v20 = vadd.f32 %v235_v51, %v198_v44  ;;  %v251_v56 = vadd.f32 %v235_v51, %v199_v1  ;;  %v252_v21 = vadd.f32 %v235_v51, %v200_v26 }
  0x98   :  { %v188_v43 = vadd.f32 %v172_v9, %v128_v23  ;;  %v238_v44 = vadd.f32 %v220_v31, %v186_v27  ;;  %v255_v33 = vmax.f32 %v239_v3, 0.0 }
  0x99   :  { %v265_v53 = vmax.f32 %v249_v17, 0.0  ;;  %v266_v24 = vmax.f32 %v250_v20, 0.0  ;;  %v267_v61 = vmax.f32 %v251_v56, 0.0  ;;  %v268_v25 = vmax.f32 %v252_v21, 0.0 }
  0x9a   :  { %v240_v4 = vadd.f32 %v220_v31, %v188_v43  ;;  %v254_v36 = vmax.f32 %v238_v44, 0.0 }
  0x9b   :  { %292 = vmatpush.msra.mxu0 %v265_v53  ;;  %312 = vmatpush.msra.mxu1 %v266_v24 }
  0x9c   :  { %332 = vmatpush.msra.mxu2 %v267_v61  ;;  %352 = vmatpush.msra.mxu3 %v268_v25  ;;  %v256_v46 = vmax.f32 %v240_v4, 0.0 }
  0x9d   :  { %293 = vmatpush.msra.mxu0 %v261_v32  ;;  %313 = vmatpush.msra.mxu1 %v262_v35 }
  0x9e   :  { %333 = vmatpush.msra.mxu2 %v263_v40  ;;  %353 = vmatpush.msra.mxu3 %v264_v41  ;;  %v225_v37 = vpop.permute.xlu1 %224 }
  0x9f   :  { %v241_v28 = vadd.f32 %v225_v37, %v189_v39  ;;  %v242_v1 = vadd.f32 %v225_v37, %v190_v48  ;;  %v243_v26 = vadd.f32 %v225_v37, %v191_v49  ;;  %v244_v2 = vadd.f32 %v225_v37, %v192_v22 }
  0xa1   :  { %v257_v5 = vmax.f32 %v241_v28, 0.0  ;;  %v258_v47 = vmax.f32 %v242_v1, 0.0  ;;  %v259_v6 = vmax.f32 %v243_v26, 0.0  ;;  %v260_v45 = vmax.f32 %v244_v2, 0.0 }
  0xa3   :  { %294 = vmatpush.msra.mxu0 %v257_v5  ;;  %314 = vmatpush.msra.mxu1 %v258_v47 }
  0xa4   :  { %334 = vmatpush.msra.mxu2 %v259_v6  ;;  %354 = vmatpush.msra.mxu3 %v260_v45 }
  0xa5   :  { %295 = vmatpush.msra.mxu0 %v253_v34  ;;  %315 = vmatpush.msra.mxu1 %v254_v36 }
  0xa6   :  { %335 = vmatpush.msra.mxu2 %v255_v33  ;;  %355 = vmatpush.msra.mxu3 %v256_v46 }
  0xa7   :  { %411 = vmatmul.msk.f32.vlgmr.msra.gmra.mxu0 %vm276_vm0, %v269_v7  ;;  %412 = vmatmul.msk.f32.vlgmr.msra.gmra.mxu1 %vm276_vm0, %v269_v7 }
  0xa8   :  { %413 = vmatmul.msk.f32.vlgmr.msra.gmra.mxu2 %vm276_vm0, %v269_v7  ;;  %414 = vmatmul.msk.f32.vlgmr.msra.gmra.mxu3 %vm276_vm0, %v269_v7 }
 0x124   :  { %v297_v59 = vpop.f32.mrf.mxu0  ;;  %v317_v60 = vpop.f32.mrf.mxu1 }
 0x125   :  { %v298_v63 = vadd.f32 %v297_v59, %v274_v8  ;;  %v318_v0 = vadd.f32 %v317_v60, %v274_v8 }
 0x127   :  { %v364_v14 = vrot.slane %v318_v0, 4  ;;  %v374_v15 = vmul.f32 0.32381848, %v318_v0  ;;  %v373_v18 = vmul.f32 0.32381848, %v298_v63 }
 0x129   :  { %v367_v54 = vsel %vm366_vm1, %v298_v63, %v364_v14  ;;  %v381_v55 = vrot.slane %v374_v15, 4 }
 0x12a   :  { %371 = vst [vmem:[%s627_s6] sm:$0x77] %v367_v54 }
 0x12b   :  { %v383_v50 = vsel %vm366_vm1, %v373_v18, %v381_v55  ;;  %v337_v58 = vpop.f32.mrf.mxu2  ;;  %v357_v51 = vpop.f32.mrf.mxu3 }
 0x12c   :  { %v387_v19 = vsub.f32 %v514_v29, %v383_v50  ;;  %v358_v11 = vadd.f32 %v357_v51, %v274_v8  ;;  %v338_v12 = vadd.f32 %v337_v58, %v274_v8 }
 0x12e   :  { %v389_v16 = vmul.f32 1.0569493, %v387_v19  ;;  %v365_v17 = vrot.slane %v358_v11, 4  ;;  %v376_v20 = vmul.f32 0.32381848, %v358_v11 }
 0x12f   :  { %v375_v57 = vmul.f32 0.32381848, %v338_v12 }
 0x130   :  { %v391_v56 = vadd.f32 1.0, %v389_v16  ;;  %v368_v21 = vsel %vm366_vm1, %v338_v12, %v365_v17  ;;  %v382_v13 = vrot.slane %v376_v20, 4 }
 0x131   :  { %372 = vst [vmem:[%s627_s6 + $0x8] sm:$0x77] %v368_v21 }
 0x132   :  { %v393_v52 = vmul.f32 127.5, %v391_v56  ;;  %v384_v23 = vsel %vm366_vm1, %v375_v57, %v382_v13 }
 0x133   :  { %v388_v29 = vsub.f32 %v519_v30, %v384_v23 }
 0x134   :  { %v395_v53 = vmax.f32 %v393_v52, 0.0 }
 0x135   :  { %v390_v61 = vmul.f32 1.0569493, %v388_v29 }
 0x136   :  { %v397_v24 = vmin.f32 %v395_v53, 255.0 }
 0x137   :  { %v392_v62 = vadd.f32 1.0, %v390_v61 }
 0x138   :  { %v399_v25 = vfloor.f32 %v397_v24 }
 0x139   :  { %v394_v9 = vmul.f32 127.5, %v392_v62 }
 0x13a   :  { %401 = vst [vmem:[%s628_s7] sm:$0x77] %v399_v25 }
 0x13b   :  { %v396_v10 = vmax.f32 %v394_v9, 0.0 }
 0x13d   :  { %v398_v27 = vmin.f32 %v396_v10, 255.0 }
 0x13f   :  { %v400_v31 = vfloor.f32 %v398_v27 }
 0x141   :  { %402 = vst [vmem:[%s628_s7 + $0x8] sm:$0x77] %v400_v31 }

// kernel: _forward_impl.8
= control target key start
LH: loop header
LB: loop body
LE: loop exit
PB: predicated region body
PF: predicated region fallthrough
CT: control target
= control target key end

     0   :  { %s70_s0 = inlined_call_operand.vmem [shape: f32[6,256], index: 0, kind: input, shape index: {}, may-alias: {0,2}]   ;;  %s71_s1 = inlined_call_operand.vmem [shape: f32[6,256], index: 1, kind: input, shape index: {}]   ;;  %s72_s2 = inlined_call_operand.vmem [shape: f32[6,256], index: 2, kind: output, shape index: {}, may-alias: {0,2}]  }
   0x1   :  { %v11_v0 = vld [vmem:[%s70_s0] sm:$0x3f]  ;;  %v12_v1 = vld [vmem:[%s70_s0 + $0x8] sm:$0x3f] }
   0x2   :  { %v13_v2 = vmax.f32 %v11_v0, 0.0  ;;  %v14_v3 = vmax.f32 %v12_v1, 0.0  ;;  %v23_v6 = vld [vmem:[%s71_s1] sm:$0x3f]  ;;  %v24_v7 = vld [vmem:[%s71_s1 + $0x8] sm:$0x3f] }
   0x3   :  { %v25_v11 = vmul.f32 0.01, %v23_v6  ;;  %v26_v13 = vmul.f32 0.01, %v24_v7 }
   0x4   :  { %v15_v4 = vmin.f32 %v13_v2, 255.0  ;;  %v16_v5 = vmin.f32 %v14_v3, 255.0 }
   0x6   :  { %v17_v8 = vmul.f32 0.007843138, %v15_v4  ;;  %v18_v9 = vmul.f32 0.007843138, %v16_v5 }
   0x8   :  { %v35_v10 = vadd.f32 -1.0, %v17_v8  ;;  %v36_v12 = vadd.f32 -1.0, %v18_v9 }
   0xa   :  { %v21_v14 = vmul.f32 0.99995, %v35_v10  ;;  %v22_v15 = vmul.f32 0.99995, %v36_v12 }
   0xc   :  { %v27_v16 = vadd.f32 %v25_v11, %v21_v14  ;;  %v28_v17 = vadd.f32 %v26_v13, %v22_v15 }
   0xe   :  { %29 = vst [vmem:[%s72_s2] sm:$0x3f] %v27_v16 }
   0xf   :  { %30 = vst [vmem:[%s72_s2 + $0x8] sm:$0x3f] %v28_v17 }

// kernel: _forward_impl.9
= control target key start
LH: loop header
LB: loop body
LE: loop exit
PB: predicated region body
PF: predicated region fallthrough
CT: control target
= control target key end

     0   :  { %s624_s0 = inlined_call_operand.vmem [shape: f32[2,768], index: 0, kind: input, shape index: {}]   ;;  %s625_s1 = inlined_call_operand.vmem [shape: f32[768,128], index: 1, kind: input, shape index: {}]   ;;  %s626_s2 = inlined_call_operand.vmem [shape: f32[1,128], index: 2, kind: input, shape index: {}]   ;;  %s627_s3 = inlined_call_operand.hbm [shape: f32[2,128], index: 3, kind: output, shape index: {}]  }
   0x1   :  { %v36_v0 = vld [vmem:[%s625_s1 + $0x78] sm:$0xff]  ;;  %v35_v1 = vld [vmem:[%s625_s1 + $0x70] sm:$0xff]  ;;  %v34_v4 = vld [vmem:[%s625_s1 + $0x68] sm:$0xff] }
   0x2   :  { %v52_v2 = vld [vmem:[%s625_s1 + $0xf8] sm:$0xff]  ;;  %138 = vmatpush.msra.mxu0 %v36_v0  ;;  %v51_v3 = vld [vmem:[%s625_s1 + $0xf0] sm:$0xff]  ;;  %v50_v5 = vld [vmem:[%s625_s1 + $0xe8] sm:$0xff] }
   0x3   :  { %158 = vmatpush.msra.mxu1 %v52_v2  ;;  %v33_v6 = vld [vmem:[%s625_s1 + $0x60] sm:$0xff]  ;;  %v32_v8 = vld [vmem:[%s625_s1 + $0x58] sm:$0xff]  ;;  %v31_v10 = vld [vmem:[%s625_s1 + $0x50] sm:$0xff] }
   0x4   :  { %139 = vmatpush.msra.mxu0 %v35_v1  ;;  %v49_v7 = vld [vmem:[%s625_s1 + $0xe0] sm:$0xff]  ;;  %v48_v9 = vld [vmem:[%s625_s1 + $0xd8] sm:$0xff]  ;;  %v47_v12 = vld [vmem:[%s625_s1 + $0xd0] sm:$0xff] }
   0x5   :  { %159 = vmatpush.msra.mxu1 %v51_v3  ;;  %v68_v11 = vld [vmem:[%s625_s1 + $0x178] sm:$0xff]  ;;  %v67_v13 = vld [vmem:[%s625_s1 + $0x170] sm:$0xff]  ;;  %v66_v15 = vld [vmem:[%s625_s1 + $0x168] sm:$0xff] }
   0x6   :  { %140 = vmatpush.msra.mxu0 %v34_v4  ;;  %178 = vmatpush.msra.mxu2 %v68_v11  ;;  %v84_v14 = vld [vmem:[%s625_s1 + $0x1f8] sm:$0xff]  ;;  %v83_v16 = vld [vmem:[%s625_s1 + $0x1f0] sm:$0xff]  ;;  %v30_v17 = vld [vmem:[%s625_s1 + $0x48] sm:$0xff] }
   0x7   :  { %160 = vmatpush.msra.mxu1 %v50_v5  ;;  %v46_v18 = vld [vmem:[%s625_s1 + $0xc8] sm:$0xff]  ;;  %198 = vmatpush.msra.mxu3 %v84_v14  ;;  %v65_v19 = vld [vmem:[%s625_s1 + $0x160] sm:$0xff]  ;;  %v64_v23 = vld [vmem:[%s625_s1 + $0x158] sm:$0xff] }
   0x8   :  { %141 = vmatpush.msra.mxu0 %v33_v6  ;;  %179 = vmatpush.msra.mxu2 %v67_v13  ;;  %v82_v20 = vld [vmem:[%s625_s1 + $0x1e8] sm:$0xff]  ;;  %v29_v21 = vld [vmem:[%s625_s1 + $0x40] sm:$0xff]  ;;  %v28_v25 = vld [vmem:[%s625_s1 + $0x38] sm:$0xff] }
   0x9   :  { %161 = vmatpush.msra.mxu1 %v49_v7  ;;  %v45_v22 = vld [vmem:[%s625_s1 + $0xc0] sm:$0xff]  ;;  %199 = vmatpush.msra.mxu3 %v83_v16  ;;  %v44_v26 = vld [vmem:[%s625_s1 + $0xb8] sm:$0xff]  ;;  %v63_v27 = vld [vmem:[%s625_s1 + $0x150] sm:$0xff] }
   0xa   :  { %142 = vmatpush.msra.mxu0 %v32_v8  ;;  %180 = vmatpush.msra.mxu2 %v66_v15  ;;  %v81_v24 = vld [vmem:[%s625_s1 + $0x1e0] sm:$0xff]  ;;  %v80_v28 = vld [vmem:[%s625_s1 + $0x1d8] sm:$0xff]  ;;  %v27_v29 = vld [vmem:[%s625_s1 + $0x30] sm:$0xff] }
   0xb   :  { %162 = vmatpush.msra.mxu1 %v48_v9  ;;  %200 = vmatpush.msra.mxu3 %v82_v20  ;;  %v43_v30 = vld [vmem:[%s625_s1 + $0xb0] sm:$0xff]  ;;  %v62_v31 = vld [vmem:[%s625_s1 + $0x148] sm:$0xff]  ;;  %v61_v35 = vld [vmem:[%s625_s1 + $0x140] sm:$0xff] }
   0xc   :  { %143 = vmatpush.msra.mxu0 %v31_v10  ;;  %181 = vmatpush.msra.mxu2 %v65_v19  ;;  %v79_v32 = vld [vmem:[%s625_s1 + $0x1d0] sm:$0xff]  ;;  %v26_v33 = vld [vmem:[%s625_s1 + $0x28] sm:$0xff]  ;;  %v25_v37 = vld [vmem:[%s625_s1 + $0x20] sm:$0xff] }
   0xd   :  { %163 = vmatpush.msra.mxu1 %v47_v12  ;;  %201 = vmatpush.msra.mxu3 %v81_v24  ;;  %v42_v34 = vld [vmem:[%s625_s1 + $0xa8] sm:$0xff]  ;;  %v41_v38 = vld [vmem:[%s625_s1 + $0xa0] sm:$0xff]  ;;  %v60_v39 = vld [vmem:[%s625_s1 + $0x138] sm:$0xff] }
   0xe   :  { %144 = vmatpush.msra.mxu0 %v30_v17  ;;  %182 = vmatpush.msra.mxu2 %v64_v23  ;;  %v78_v36 = vld [vmem:[%s625_s1 + $0x1c8] sm:$0xff]  ;;  %v77_v40 = vld [vmem:[%s625_s1 + $0x1c0] sm:$0xff]  ;;  %v24_v41 = vld [vmem:[%s625_s1 + $0x18] sm:$0xff] }
   0xf   :  { %164 = vmatpush.msra.mxu1 %v46_v18  ;;  %202 = vmatpush.msra.mxu3 %v80_v28  ;;  %v40_v42 = vld [vmem:[%s625_s1 + $0x98] sm:$0xff]  ;;  %v59_v43 = vld [vmem:[%s625_s1 + $0x130] sm:$0xff]  ;;  %v58_v47 = vld [vmem:[%s625_s1 + $0x128] sm:$0xff] }
  0x10   :  { %145 = vmatpush.msra.mxu0 %v29_v21  ;;  %183 = vmatpush.msra.mxu2 %v63_v27  ;;  %v76_v44 = vld [vmem:[%s625_s1 + $0x1b8] sm:$0xff]  ;;  %v23_v45 = vld [vmem:[%s625_s1 + $0x10] sm:$0xff]  ;;  %v22_v49 = vld [vmem:[%s625_s1 + $0x8] sm:$0xff] }
  0x11   :  { %165 = vmatpush.msra.mxu1 %v45_v22  ;;  %203 = vmatpush.msra.mxu3 %v79_v32  ;;  %v39_v46 = vld [vmem:[%s625_s1 + $0x90] sm:$0xff]  ;;  %v38_v50 = vld [vmem:[%s625_s1 + $0x88] sm:$0xff]  ;;  %v57_v51 = vld [vmem:[%s625_s1 + $0x120] sm:$0xff] }
  0x12   :  { %146 = vmatpush.msra.mxu0 %v28_v25  ;;  %184 = vmatpush.msra.mxu2 %v62_v31  ;;  %v75_v48 = vld [vmem:[%s625_s1 + $0x1b0] sm:$0xff]  ;;  %v74_v52 = vld [vmem:[%s625_s1 + $0x1a8] sm:$0xff]  ;;  %v21_v53 = vld [vmem:[%s625_s1] sm:$0xff] }
  0x13   :  { %166 = vmatpush.msra.mxu1 %v44_v26  ;;  %204 = vmatpush.msra.mxu3 %v78_v36  ;;  %v37_v54 = vld [vmem:[%s625_s1 + $0x80] sm:$0xff]  ;;  %v100_v56 = vld [vmem:[%s625_s1 + $0x278] sm:$0xff]  ;;  %v99_v61 = vld [vmem:[%s625_s1 + $0x270] sm:$0xff] }
  0x14   :  { %147 = vmatpush.msra.mxu0 %v27_v29  ;;  %185 = vmatpush.msra.mxu2 %v61_v35  ;;  %v15_v55 = vld [vmem:[%s624_s0] sm:$0xff]  ;;  %v116_v57 = vld [vmem:[%s625_s1 + $0x2f8] sm:$0xff]  ;;  %v115_v62 = vld [vmem:[%s625_s1 + $0x2f0] sm:$0xff] }
  0x15   :  { %167 = vmatpush.msra.mxu1 %v43_v30  ;;  %205 = vmatpush.msra.mxu3 %v77_v40  ;;  %v17_v58 = vadd.f32 1.0, %v15_v55  ;;  %v56_v59 = vld [vmem:[%s625_s1 + $0x118] sm:$0xff]  ;;  %v73_v60 = vld [vmem:[%s625_s1 + $0x1a0] sm:$0xff]  ;;  %v55_v63 = vld [vmem:[%s625_s1 + $0x110] sm:$0xff] }
  0x16   :  { %148 = vmatpush.msra.mxu0 %v26_v33  ;;  %186 = vmatpush.msra.mxu2 %v60_v39  ;;  %v72_v1 = vld [vmem:[%s625_s1 + $0x198] sm:$0xff]  ;;  %v16_v2 = vld [vmem:[%s624_s0 + $0x8] sm:$0xf]  ;;  %v71_v7 = vld [vmem:[%s625_s1 + $0x190] sm:$0xff] }
  0x17   :  { %168 = vmatpush.msra.mxu1 %v42_v34  ;;  %206 = vmatpush.msra.mxu3 %v76_v44  ;;  %v19_v0 = vmul.f32 0.5, %v17_v58  ;;  %v98_v3 = vld [vmem:[%s625_s1 + $0x268] sm:$0xff]  ;;  %v18_v5 = vadd.f32 1.0, %v16_v2 }
  0x18   :  { %149 = vmatpush.msra.mxu0 %v25_v37  ;;  %187 = vmatpush.msra.mxu2 %v59_v43  ;;  %v114_v4 = vld [vmem:[%s625_s1 + $0x2e8] sm:$0xff] }
  0x19   :  { %169 = vmatpush.msra.mxu1 %v41_v38  ;;  %207 = vmatpush.msra.mxu3 %v75_v48  ;;  %123 = vst [vmem:[#allocation1] ss:$4 sm:$0xff] %v19_v0  ;;  %v54_v6 = vld [vmem:[%s625_s1 + $0x108] sm:$0xff] }
  0x1a   :  { %150 = vmatpush.msra.mxu0 %v24_v41  ;;  %188 = vmatpush.msra.mxu2 %v58_v47 }
  0x1b   :  { %170 = vmatpush.msra.mxu1 %v40_v42  ;;  %208 = vmatpush.msra.mxu3 %v74_v52 }
  0x1c   :  { %151 = vmatpush.msra.mxu0 %v23_v45  ;;  %189 = vmatpush.msra.mxu2 %v57_v51 }
  0x1d   :  { %171 = vmatpush.msra.mxu1 %v39_v46  ;;  %209 = vmatpush.msra.mxu3 %v73_v60 }
  0x1e   :  { %152 = vmatpush.msra.mxu0 %v22_v49  ;;  %190 = vmatpush.msra.mxu2 %v56_v59 }
  0x1f   :  { %172 = vmatpush.msra.mxu1 %v38_v50 }
  0x20   :  { %153 = vmatpush.msra.mxu0 %v21_v53 }
  0x21   :  { %173 = vmatpush.msra.mxu1 %v37_v54 }
  0x22   :  { %218 = vmatpush.msrb.mxu0 %v100_v56 }
  0x23   :  { %238 = vmatpush.msrb.mxu1 %v116_v57 }
  0x24   :  { %219 = vmatpush.msrb.mxu0 %v99_v61 }
  0x25   :  { %239 = vmatpush.msrb.mxu1 %v115_v62 }
  0x26   :  { %8 = vsyncpa [#allocation3], 0  ;;  %v97_v8 = vld [vmem:[%s625_s1 + $0x260] sm:$0xff]  ;;  %191 = vmatpush.msra.mxu2 %v55_v63  ;;  %210 = vmatpush.msra.mxu3 %v72_v1  ;;  %v20_v10 = vmul.f32 0.5, %v18_v5  ;;  %v70_v12 = vld [vmem:[%s625_s1 + $0x188] sm:$0xff]  ;;  %s266_s21 = sshll.u32 %s627_s3, 4  ;;  %s267_s21 = int_to_ptr.hbm [resolvable:$true] %s266_s21 }
  0x27   :  { %v113_v9 = vld [vmem:[%s625_s1 + $0x2e0] sm:$0xff]  ;;  %220 = vmatpush.msrb.mxu0 %v98_v3  ;;  %240 = vmatpush.msrb.mxu1 %v114_v4  ;;  %v96_v13 = vld [vmem:[%s625_s1 + $0x258] sm:$0xff]  ;;  %v95_v16 = vld [vmem:[%s625_s1 + $0x250] sm:$0xff] }
  0x28   :  { %v53_v11 = vld [vmem:[%s625_s1 + $0x100] sm:$0xff]  ;;  %v112_v14 = vld [vmem:[%s625_s1 + $0x2d8] sm:$0xff]  ;;  %192 = vmatpush.msra.mxu2 %v54_v6  ;;  %211 = vmatpush.msra.mxu3 %v71_v7  ;;  %125 = vst [vmem:[#allocation1 + $0x20] ss:$4 sm:$0xff] %v20_v10  ;;  %v111_v17 = vld [vmem:[%s625_s1 + $0x2d0] sm:$0xff] }
  0x29   :  { %221 = vmatpush.msrb.mxu0 %v97_v8  ;;  %241 = vmatpush.msrb.mxu1 %v113_v9  ;;  %v69_v15 = vld [vmem:[%s625_s1 + $0x180] sm:$0xff]  ;;  %v128_v18 = vld.sshfl [vmem:[#allocation1 + $0x10] sm:$0xff pattern:$0x73625140]  ;;  %v94_v20 = vld [vmem:[%s625_s1 + $0x248] sm:$0xff] }
  0x2a   :  { %193 = vmatpush.msra.mxu2 %v53_v11  ;;  %212 = vmatpush.msra.mxu3 %v70_v12  ;;  %v126_v19 = vld.sshfl [vmem:[#allocation1] sm:$0xff pattern:$0x73625140]  ;;  %v110_v21 = vld [vmem:[%s625_s1 + $0x2c8] sm:$0xff]  ;;  %v92_v26 = vld [vmem:[%s625_s1 + $0x238] sm:$0xff] }
  0x2b   :  { %222 = vmatpush.msrb.mxu0 %v96_v13  ;;  %242 = vmatpush.msrb.mxu1 %v112_v14  ;;  %v129_v22 = vld.sshfl [vmem:[#allocation1 + $0x18] sm:$0xff pattern:$0x73625140]  ;;  %v127_v23 = vld.sshfl [vmem:[#allocation1 + $0x8] sm:$0xff pattern:$0x73625140] }
  0x2c   :  { %194 = vmatmul.f32.vlgmr.msra.gmra.mxu2 %v128_v18  ;;  %213 = vmatpush.msra.mxu3 %v69_v15  ;;  %v93_v24 = vld [vmem:[%s625_s1 + $0x240] sm:$0xff]  ;;  %v108_v27 = vld [vmem:[%s625_s1 + $0x2b8] sm:$0xff]  ;;  %v91_v28 = vld [vmem:[%s625_s1 + $0x230] sm:$0xff] }
  0x2d   :  { %223 = vmatpush.msrb.mxu0 %v95_v16  ;;  %243 = vmatpush.msrb.mxu1 %v111_v17  ;;  %v109_v25 = vld [vmem:[%s625_s1 + $0x2c0] sm:$0xff]  ;;  %v107_v29 = vld [vmem:[%s625_s1 + $0x2b0] sm:$0xff]  ;;  %v90_v30 = vld [vmem:[%s625_s1 + $0x228] sm:$0xff] }
  0x2e   :  { %154 = vmatmul.f32.vlgmr.msra.gmra.mxu0 %v126_v19  ;;  %214 = vmatmul.f32.vlgmr.msra.gmra.mxu3 %v129_v22  ;;  %v106_v31 = vld [vmem:[%s625_s1 + $0x2a8] sm:$0xff]  ;;  %v89_v32 = vld [vmem:[%s625_s1 + $0x220] sm:$0xff]  ;;  %v88_v34 = vld [vmem:[%s625_s1 + $0x218] sm:$0xff] }
  0x2f   :  { %224 = vmatpush.msrb.mxu0 %v94_v20  ;;  %244 = vmatpush.msrb.mxu1 %v110_v21  ;;  %v105_v33 = vld [vmem:[%s625_s1 + $0x2a0] sm:$0xff]  ;;  %v104_v35 = vld [vmem:[%s625_s1 + $0x298] sm:$0xff]  ;;  %v87_v36 = vld [vmem:[%s625_s1 + $0x210] sm:$0xff] }
  0x30   :  { %174 = vmatmul.f32.vlgmr.msra.gmra.mxu1 %v127_v23  ;;  %v103_v37 = vld [vmem:[%s625_s1 + $0x290] sm:$0xff]  ;;  %v86_v38 = vld [vmem:[%s625_s1 + $0x208] sm:$0xff]  ;;  %v85_v40 = vld [vmem:[%s625_s1 + $0x200] sm:$0xff] }
  0x31   :  { %225 = vmatpush.msrb.mxu0 %v93_v24  ;;  %245 = vmatpush.msrb.mxu1 %v109_v25  ;;  %v102_v39 = vld [vmem:[%s625_s1 + $0x288] sm:$0xff]  ;;  %v101_v41 = vld [vmem:[%s625_s1 + $0x280] sm:$0xff]  ;;  %s303_s1 = smov [#allocation2]  }
  0x32   :  { %v130_v42 = vld.sshfl [vmem:[#allocation1 + $0x20] sm:$0xff pattern:$0x73625140]  ;;  %v131_v43 = vld.sshfl [vmem:[#allocation1 + $0x28] sm:$0xff pattern:$0x73625140] }
  0x33   :  { %226 = vmatpush.msrb.mxu0 %v92_v26  ;;  %246 = vmatpush.msrb.mxu1 %v108_v27  ;;  %v276_v44 = vld [vmem:[%s626_s2] ss:$0 sm:$0xff]  ;;  %s264_s18 = sshll.u32 %s303_s1, 4  ;;  %s265_s18 = int_to_ptr.vmem [resolvable:$true] %s264_s18 }
  0x35   :  { %227 = vmatpush.msrb.mxu0 %v91_v28  ;;  %247 = vmatpush.msrb.mxu1 %v107_v29 }
  0x37   :  { %228 = vmatpush.msrb.mxu0 %v90_v30  ;;  %248 = vmatpush.msrb.mxu1 %v106_v31 }
  0x39   :  { %229 = vmatpush.msrb.mxu0 %v89_v32  ;;  %249 = vmatpush.msrb.mxu1 %v105_v33 }
  0x3b   :  { %230 = vmatpush.msrb.mxu0 %v88_v34  ;;  %250 = vmatpush.msrb.mxu1 %v104_v35 }
  0x3d   :  { %231 = vmatpush.msrb.mxu0 %v87_v36  ;;  %251 = vmatpush.msrb.mxu1 %v103_v37 }
  0x3f   :  { %232 = vmatpush.msrb.mxu0 %v86_v38  ;;  %252 = vmatpush.msrb.mxu1 %v102_v39 }
  0x41   :  { %233 = vmatpush.msrb.mxu0 %v85_v40  ;;  %253 = vmatpush.msrb.mxu1 %v101_v41 }
  0x42   :  { %234 = vmatmul.f32.vlgmr.msrb.gmra.mxu0 %v130_v42  ;;  %254 = vmatmul.f32.vlgmr.msrb.gmra.mxu1 %v131_v43 }
  0xab   :  { %v155_v45 = vpop.f32.mrf.mxu0 }
  0xac   :  { %v156_v46 = vadd.f32 %v276_v44, %v155_v45 }
  0xad   :  { %v175_v47 = vpop.f32.mrf.mxu1 }
  0xae   :  { %v176_v48 = vadd.f32 %v175_v47, %v156_v46 }
  0xaf   :  { %v195_v49 = vpop.f32.mrf.mxu2 }
  0xb0   :  { %v196_v50 = vadd.f32 %v195_v49, %v176_v48 }
  0xb1   :  { %v215_v51 = vpop.f32.mrf.mxu3 }
  0xb2   :  { %v216_v52 = vadd.f32 %v215_v51, %v196_v50 }
  0xbf   :  { %v235_v53 = vpop.f32.mrf.mxu0  ;;  %v255_v54 = vpop.f32.mrf.mxu1 }
  0xc0   :  { %v236_v55 = vadd.f32 %v235_v53, %v216_v52 }
  0xc2   :  { %v256_v56 = vadd.f32 %v255_v54, %v236_v55 }
  0xc4   :  { %258 = vst [vmem:[#allocation2] sm:$0x3] %v256_v56 }
  0xc5   :  { %269 = dma.vmem_to_hbm [thread:$0]  %s265_s18, 32, %s267_s21, [#allocation3]  }
  0xc6   :  { %301 = dma.done.wait [#allocation3], 32  }
  0xc7   :  { %302 = vsyncadd [#allocation3], 4294967264 }
  0xc8   :  { %274 = vsyncpa [#allocation3], 1 }

</bundles_post_ra>
